<compile_context>
chip_gen: v7x
topology: tpu7x:2x2x1
jax: 0.10.0
libtpu: 0.0.40
codegen_flags: <defaults>
</compile_context>

<pallas_src>
import functools
from typing import NamedTuple

import jax
import jax.numpy as jnp
from jax.experimental import pallas as pl
from jax.experimental.pallas import tpu as pltpu

BN_EPS = 1e-5
LANE = 128
NEG_INF = -1e30  # padded-vocab / already-selected logit fill; never top-k'd


def _round_up(n, m):
    return ((n + m - 1) // m) * m


def _pad_last(a, target, fill=0.0):
    pad = target - a.shape[-1]
    if pad == 0:
        return a
    return jnp.pad(a, [(0, 0)] * (a.ndim - 1) + [(0, pad)], constant_values=fill)


def _pad_axis0(a, target, fill=0.0):
    pad = target - a.shape[0]
    if pad == 0:
        return a
    return jnp.pad(a, [(0, pad)] + [(0, 0)] * (a.ndim - 1), constant_values=fill)


def _mapping_kernel(x_ref,
                    w1_ref, g1_ref, beta1_ref,
                    w2_ref, g2_ref, beta2_ref,
                    w3_ref, b3_ref,
                    idx_ref, logits_ref, probs_ref=None, *, seq_len):
    """Fused MLP + train-mode BatchNorm + ReLU + (softmax) + top-k.

    Pre-BN linear biases are omitted: BatchNorm's mean subtraction cancels
    them exactly, so the module math is unchanged.  Weights are bf16 (MXU
    operands); all BN / softmax math is f32 (v5e has no bf16 VPU/EUP).
    """
    f32 = jnp.float32
    bf16 = jnp.bfloat16

    x = x_ref[...]

    # ---- fc1 + bn1 (whole-batch stats) + relu -------------------------------
    h = jnp.dot(x.astype(bf16), w1_ref[...], preferred_element_type=f32)
    mu = jnp.mean(h, axis=0, keepdims=True)
    d = h - mu
    var = jnp.mean(d * d, axis=0, keepdims=True)         # two-pass: no cancellation
    h = d * jax.lax.rsqrt(var + BN_EPS) * g1_ref[...] + beta1_ref[...]
    h = jnp.maximum(h, 0.0)

    # ---- fc2 + bn2 + relu ----------------------------------------------------
    h = jnp.dot(h.astype(bf16), w2_ref[...], preferred_element_type=f32)
    mu = jnp.mean(h, axis=0, keepdims=True)
    d = h - mu
    var = jnp.mean(d * d, axis=0, keepdims=True)
    h = d * jax.lax.rsqrt(var + BN_EPS) * g2_ref[...] + beta2_ref[...]
    h = jnp.maximum(h, 0.0)

    # ---- fc3 (temperature = 1.0); padded vocab lanes carry b3 = NEG_INF ------
    logits = jnp.dot(h.astype(bf16), w3_ref[...], preferred_element_type=f32) + b3_ref[...]
    logits_ref[...] = logits

    # ---- optional softmax (EUP exp + approximate reciprocal) ------------------
    if probs_ref is not None:
        m = jnp.max(logits, axis=-1, keepdims=True)
        e = jnp.exp(logits - m)
        denom = jnp.sum(e, axis=-1, keepdims=True)
        probs_ref[...] = e * pl.reciprocal(denom, approx=True)

    # ---- fused top-k over the logits (softmax is strictly monotone per row) --
    batch, vocab_p = logits.shape
    idx_pad = idx_ref.shape[-1]
    lane_iota = jax.lax.broadcasted_iota(jnp.int32, (batch, vocab_p), 1)
    out_cols = jax.lax.broadcasted_iota(jnp.int32, (batch, idx_pad), 1)
    idx_out = jnp.zeros((batch, idx_pad), jnp.int32)
    work = logits
    for k in range(seq_len):  # static unroll; seq_len is small
        m = jnp.max(work, axis=-1, keepdims=True)
        # lowest index among the maxima: matches lax.top_k / torch.topk ties
        sel = jnp.min(jnp.where(work == m, lane_iota, vocab_p),
                      axis=-1, keepdims=True)
        idx_out = jnp.where(out_cols == k, sel, idx_out)
        work = jnp.where(lane_iota == sel, NEG_INF, work)
    idx_ref[...] = idx_out   # lane-dense (batch, 128) int32 store


class PreparedParams(NamedTuple):
    w1: jax.Array     # (d_in, hidden_p)      bf16
    g1: jax.Array     # (1, hidden_p)         f32
    beta1: jax.Array  # (1, hidden_p)         f32
    w2: jax.Array     # (hidden_p, hidden_p)  bf16
    g2: jax.Array     # (1, hidden_p)         f32
    beta2: jax.Array  # (1, hidden_p)         f32
    w3: jax.Array     # (hidden_p, vocab_p)   bf16
    b3: jax.Array     # (1, vocab_p)          f32, NEG_INF in padded lanes
    vocab: int


def prepare_params(params, *, weight_dtype=jnp.bfloat16):
    """One-time padding / casting of the mapping-network parameters.

    b1/b2 are dropped (train-mode BN cancels them exactly); hidden/vocab dims
    are padded to the 128-lane vreg width; weights are cast to bf16 for the
    MXU.  Per-call code never touches the parameters again.
    """
    (w1, _b1, g1, beta1, w2, _b2, g2, beta2, w3, b3) = params
    hidden = w1.shape[1]
    vocab = w3.shape[1]
    hidden_p = _round_up(hidden, LANE)
    vocab_p = _round_up(vocab, LANE)
    f32 = jnp.float32
    return PreparedParams(
        w1=_pad_last(w1, hidden_p).astype(weight_dtype),
        g1=_pad_last(g1.astype(f32), hidden_p),
        beta1=_pad_last(beta1.astype(f32), hidden_p),
        w2=_pad_last(_pad_axis0(w2, hidden_p), hidden_p).astype(weight_dtype),
        g2=_pad_last(g2.astype(f32), hidden_p),
        beta2=_pad_last(beta2.astype(f32), hidden_p),
        w3=_pad_last(_pad_axis0(w3, hidden_p), vocab_p).astype(weight_dtype),
        b3=_pad_last(b3.astype(f32), vocab_p, fill=NEG_INF),
        vocab=vocab,
    )


def mapping_network_apply(x, prep, seq_len, *, want_probs=False):
    """Run the fused mapping-network kernel.

    Returns (top_indices, logits) or (top_indices, logits, probs).
    Note: train-mode BatchNorm with batch==1 zeroes the normalized
    activations (logits == b3 only), matching PyTorch train() semantics.
    Note: probs use an approximate EUP reciprocal (rows sum to ~1).
    """
    batch, d_in = x.shape
    hidden_p = prep.w1.shape[1]
    vocab_p = prep.w3.shape[1]
    idx_pad = _round_up(max(seq_len, 1), LANE)

    inputs = (x, prep.w1, prep.g1, prep.beta1, prep.w2, prep.g2, prep.beta2,
              prep.w3, prep.b3)

    out_shapes = [jax.ShapeDtypeStruct((batch, idx_pad), jnp.int32),
                  jax.ShapeDtypeStruct((batch, vocab_p), jnp.float32)]
    if want_probs:
        out_shapes.append(jax.ShapeDtypeStruct((batch, vocab_p), jnp.float32))

    # VMEM budget from the actual footprint (+ f32 intermediates, x2 headroom).
    in_bytes = sum(int(a.size) * a.dtype.itemsize for a in inputs)
    out_bytes = batch * idx_pad * 4 + batch * vocab_p * 4 * (2 if want_probs else 1)
    scratch_bytes = 4 * batch * (2 * hidden_p + 2 * vocab_p)
    vmem_limit = int(min(max(2 * (in_bytes + out_bytes + scratch_bytes), 1 << 20),
                         100 << 20))

    flops = 2 * batch * hidden_p * (d_in + hidden_p + vocab_p)
    transcendentals = batch * vocab_p if want_probs else 0

    vmem_spec = lambda: pl.BlockSpec(memory_space=pltpu.MemorySpace.VMEM)
    outs = pl.pallas_call(
        functools.partial(_mapping_kernel, seq_len=seq_len),
        out_shape=tuple(out_shapes),
        in_specs=[vmem_spec() for _ in inputs],
        out_specs=tuple(vmem_spec() for _ in out_shapes),
        compiler_params=pltpu.CompilerParams(vmem_limit_bytes=vmem_limit),
        cost_estimate=pl.CostEstimate(flops=flops,
                                      transcendentals=transcendentals,
                                      bytes_accessed=in_bytes + out_bytes),
    )(*inputs)

    top_idx = outs[0][:, :seq_len]
    logits = outs[1][:, :prep.vocab]
    if want_probs:
        return top_idx, logits, outs[2][:, :prep.vocab]
    return top_idx, logits


def mapping_network_forward(x, prep, seq_len):
    """MappingNetwork.forward semantics: top-`seq_len` token ids (int32)."""
    return mapping_network_apply(x, prep, seq_len)[0]


def init_params(key, input_size, hidden_size, vocab_size):
    """Deterministic synthetic parameter init matching nn.Linear/BatchNorm1d.

    Weights stored as (in, out).  b1/b2 are generated (the PyTorch module has
    them) but are mathematically inert: train-mode BN cancels them.
    """
    k = jax.random.split(key, 6)
    s1 = 1.0 / jnp.sqrt(input_size)
    s2 = 1.0 / jnp.sqrt(hidden_size)
    w1 = jax.random.uniform(k[0], (input_size, hidden_size), jnp.float32, -s1, s1)
    b1 = jax.random.uniform(k[1], (1, hidden_size), jnp.float32, -s1, s1)
    w2 = jax.random.uniform(k[2], (hidden_size, hidden_size), jnp.float32, -s2, s2)
    b2 = jax.random.uniform(k[3], (1, hidden_size), jnp.float32, -s2, s2)
    w3 = jax.random.uniform(k[4], (hidden_size, vocab_size), jnp.float32, -s2, s2)
    b3 = jax.random.uniform(k[5], (1, vocab_size), jnp.float32, -s2, s2)
    g1 = jnp.ones((1, hidden_size), jnp.float32)
    beta1 = jnp.zeros((1, hidden_size), jnp.float32)
    g2 = jnp.ones((1, hidden_size), jnp.float32)
    beta2 = jnp.zeros((1, hidden_size), jnp.float32)
    return (w1, b1, g1, beta1, w2, b2, g2, beta2, w3, b3)


if __name__ == "__main__":
    # Small shapes consistent with the module's forward:
    #   image CLS features: (batch, input_size); vocab logits: (batch, vocab)
    batch, input_size, hidden_size, vocab_size, seq_len = 8, 32, 64, 512, 8

    key = jax.random.PRNGKey(0)
    k_feat, k_param = jax.random.split(key)
    # Stand-in for ViT CLS-token features (pretrained encoder not translated).
    image_features = jax.random.normal(k_feat, (batch, input_size), jnp.float32)
    raw_params = init_params(k_param, input_size, hidden_size, vocab_size)
    prep = prepare_params(raw_params)   # one-time pad/cast, hoisted off the call path

    top_indices = mapping_network_forward(image_features, prep, seq_len)
    top_indices = jax.block_until_ready(top_indices)
    assert top_indices.shape == (batch, seq_len)
    assert top_indices.dtype == jnp.int32

    # ---- correctness checks --------------------------------------------------
    idx_k, logits_k, probs_k = mapping_network_apply(
        image_features, prep, seq_len, want_probs=True)

    def ref_cast(x, p, cast):
        """Pure-JAX reference of the module math (INCLUDING b1/b2) with the
        dot operands cast to `cast`, proving the BN bias-cancellation and the
        bf16-at-the-MXU structure."""
        (w1, b1, g1, be1, w2, b2, g2, be2, w3, b3) = p
        def dot(a, w):
            return jnp.dot(a.astype(cast), w.astype(cast),
                           preferred_element_type=jnp.float32)
        h = dot(x, w1) + b1
        h = (h - h.mean(0, keepdims=True)) / jnp.sqrt(h.var(0, keepdims=True) + BN_EPS) * g1 + be1
        h = jnp.maximum(h, 0.0)
        h = dot(h, w2) + b2
        h = (h - h.mean(0, keepdims=True)) / jnp.sqrt(h.var(0, keepdims=True) + BN_EPS) * g2 + be2
        h = jnp.maximum(h, 0.0)
        return dot(h, w3) + b3

    # (a) structural check: same bf16 cast points in pure JAX -> tight match.
    logits_bf16_ref = ref_cast(image_features, raw_params, jnp.bfloat16)
    assert jnp.allclose(logits_k, logits_bf16_ref, atol=1e-2, rtol=1e-2)

    # (b) module semantics: full-f32 reference; tolerance covers bf16 weights.
    logits_f32_ref = ref_cast(image_features, raw_params, jnp.float32)
    assert jnp.allclose(logits_k, logits_f32_ref, atol=1.5e-1, rtol=1.5e-1)

    # (c) softmax path: approx reciprocal -> rows sum to ~1, values ~exact.
    assert jnp.allclose(probs_k, jax.nn.softmax(logits_k, axis=-1),
                        atol=2e-3, rtol=2e-3)

    # (d) fused top-k == lax.top_k of the kernel's own logits (monotone softmax
    #     => identical indices as top-k over probabilities; both break ties
    #     toward the lower index).
    _, topk_ref = jax.lax.top_k(logits_k, seq_len)
    assert jnp.array_equal(idx_k, topk_ref)

    print("KERNEL_OK")
</pallas_src>

<mosaic_0001>
module attributes {stable_mosaic.version = 11 : i64} {
  func.func @_mapping_kernel(%arg0: memref<8x32xf32, #tpu.memory_space<vmem>>, %arg1: memref<32x128xbf16, #tpu.memory_space<vmem>>, %arg2: memref<1x128xf32, #tpu.memory_space<vmem>>, %arg3: memref<1x128xf32, #tpu.memory_space<vmem>>, %arg4: memref<128x128xbf16, #tpu.memory_space<vmem>>, %arg5: memref<1x128xf32, #tpu.memory_space<vmem>>, %arg6: memref<1x128xf32, #tpu.memory_space<vmem>>, %arg7: memref<128x512xbf16, #tpu.memory_space<vmem>>, %arg8: memref<1x512xf32, #tpu.memory_space<vmem>>, %arg9: memref<8x128xi32, #tpu.memory_space<vmem>>, %arg10: memref<8x512xf32, #tpu.memory_space<vmem>>) attributes {dimension_semantics = [], scalar_prefetch = 0 : i64, scratch_operands = 0 : i64, tpu.core_type = #tpu.core_type<tc>} {
    %c0 = arith.constant 0 : index
    %c0_0 = arith.constant 0 : index
    %0 = vector.load %arg0[%c0, %c0_0] : memref<8x32xf32, #tpu.memory_space<vmem>>, vector<8x32xf32>
    %1 = arith.truncf %0 : vector<8x32xf32> to vector<8x32xbf16>
    %c0_1 = arith.constant 0 : index
    %c0_2 = arith.constant 0 : index
    %2 = vector.load %arg1[%c0_1, %c0_2] : memref<32x128xbf16, #tpu.memory_space<vmem>>, vector<32x128xbf16>
    %cst = arith.constant dense<0.000000e+00> : vector<8x128xf32>
    %3 = tpu.matmul %1, %2, %cst {dimension_numbers = #tpu.dot_dimension_numbers<[1], [0], [0], [1], [0, 0, 1, 1], [], []>} : vector<8x32xbf16>, vector<32x128xbf16>, vector<8x128xf32> -> vector<8x128xf32>
    %cst_3 = arith.constant dense<0.000000e+00> : vector<128xf32>
    %4 = vector.multi_reduction <add>, %3, %cst_3 [0] : vector<8x128xf32> to vector<128xf32>
    %5 = vector.shape_cast %4 : vector<128xf32> to vector<1x128xf32>
    %cst_4 = arith.constant 8.000000e+00 : f32
    %6 = vector.broadcast %cst_4 : f32 to vector<1x128xf32>
    %7 = arith.divf %5, %6 : vector<1x128xf32>
    %8 = vector.broadcast %7 : vector<1x128xf32> to vector<8x128xf32>
    %9 = arith.subf %3, %8 : vector<8x128xf32>
    %10 = arith.mulf %9, %9 : vector<8x128xf32>
    %cst_5 = arith.constant dense<0.000000e+00> : vector<128xf32>
    %11 = vector.multi_reduction <add>, %10, %cst_5 [0] : vector<8x128xf32> to vector<128xf32>
    %12 = vector.shape_cast %11 : vector<128xf32> to vector<1x128xf32>
    %cst_6 = arith.constant 8.000000e+00 : f32
    %13 = vector.broadcast %cst_6 : f32 to vector<1x128xf32>
    %14 = arith.divf %12, %13 : vector<1x128xf32>
    %cst_7 = arith.constant 9.99999974E-6 : f32
    %15 = vector.broadcast %cst_7 : f32 to vector<1x128xf32>
    %16 = arith.addf %14, %15 : vector<1x128xf32>
    %17 = math.rsqrt %16 : vector<1x128xf32>
    %18 = vector.broadcast %17 : vector<1x128xf32> to vector<8x128xf32>
    %19 = arith.mulf %9, %18 : vector<8x128xf32>
    %c0_8 = arith.constant 0 : index
    %c0_9 = arith.constant 0 : index
    %20 = vector.load %arg2[%c0_8, %c0_9] : memref<1x128xf32, #tpu.memory_space<vmem>>, vector<1x128xf32>
    %21 = vector.broadcast %20 : vector<1x128xf32> to vector<8x128xf32>
    %22 = arith.mulf %19, %21 : vector<8x128xf32>
    %c0_10 = arith.constant 0 : index
    %c0_11 = arith.constant 0 : index
    %23 = vector.load %arg3[%c0_10, %c0_11] : memref<1x128xf32, #tpu.memory_space<vmem>>, vector<1x128xf32>
    %24 = vector.broadcast %23 : vector<1x128xf32> to vector<8x128xf32>
    %25 = arith.addf %22, %24 : vector<8x128xf32>
    %cst_12 = arith.constant 0.000000e+00 : f32
    %26 = vector.broadcast %cst_12 : f32 to vector<8x128xf32>
    %27 = arith.maximumf %25, %26 : vector<8x128xf32>
    %28 = arith.truncf %27 : vector<8x128xf32> to vector<8x128xbf16>
    %c0_13 = arith.constant 0 : index
    %c0_14 = arith.constant 0 : index
    %29 = vector.load %arg4[%c0_13, %c0_14] : memref<128x128xbf16, #tpu.memory_space<vmem>>, vector<128x128xbf16>
    %cst_15 = arith.constant dense<0.000000e+00> : vector<8x128xf32>
    %30 = tpu.matmul %28, %29, %cst_15 {dimension_numbers = #tpu.dot_dimension_numbers<[1], [0], [0], [1], [0, 0, 1, 1], [], []>} : vector<8x128xbf16>, vector<128x128xbf16>, vector<8x128xf32> -> vector<8x128xf32>
    %cst_16 = arith.constant dense<0.000000e+00> : vector<128xf32>
    %31 = vector.multi_reduction <add>, %30, %cst_16 [0] : vector<8x128xf32> to vector<128xf32>
    %32 = vector.shape_cast %31 : vector<128xf32> to vector<1x128xf32>
    %cst_17 = arith.constant 8.000000e+00 : f32
    %33 = vector.broadcast %cst_17 : f32 to vector<1x128xf32>
    %34 = arith.divf %32, %33 : vector<1x128xf32>
    %35 = vector.broadcast %34 : vector<1x128xf32> to vector<8x128xf32>
    %36 = arith.subf %30, %35 : vector<8x128xf32>
    %37 = arith.mulf %36, %36 : vector<8x128xf32>
    %cst_18 = arith.constant dense<0.000000e+00> : vector<128xf32>
    %38 = vector.multi_reduction <add>, %37, %cst_18 [0] : vector<8x128xf32> to vector<128xf32>
    %39 = vector.shape_cast %38 : vector<128xf32> to vector<1x128xf32>
    %cst_19 = arith.constant 8.000000e+00 : f32
    %40 = vector.broadcast %cst_19 : f32 to vector<1x128xf32>
    %41 = arith.divf %39, %40 : vector<1x128xf32>
    %cst_20 = arith.constant 9.99999974E-6 : f32
    %42 = vector.broadcast %cst_20 : f32 to vector<1x128xf32>
    %43 = arith.addf %41, %42 : vector<1x128xf32>
    %44 = math.rsqrt %43 : vector<1x128xf32>
    %45 = vector.broadcast %44 : vector<1x128xf32> to vector<8x128xf32>
    %46 = arith.mulf %36, %45 : vector<8x128xf32>
    %c0_21 = arith.constant 0 : index
    %c0_22 = arith.constant 0 : index
    %47 = vector.load %arg5[%c0_21, %c0_22] : memref<1x128xf32, #tpu.memory_space<vmem>>, vector<1x128xf32>
    %48 = vector.broadcast %47 : vector<1x128xf32> to vector<8x128xf32>
    %49 = arith.mulf %46, %48 : vector<8x128xf32>
    %c0_23 = arith.constant 0 : index
    %c0_24 = arith.constant 0 : index
    %50 = vector.load %arg6[%c0_23, %c0_24] : memref<1x128xf32, #tpu.memory_space<vmem>>, vector<1x128xf32>
    %51 = vector.broadcast %50 : vector<1x128xf32> to vector<8x128xf32>
    %52 = arith.addf %49, %51 : vector<8x128xf32>
    %cst_25 = arith.constant 0.000000e+00 : f32
    %53 = vector.broadcast %cst_25 : f32 to vector<8x128xf32>
    %54 = arith.maximumf %52, %53 : vector<8x128xf32>
    %55 = arith.truncf %54 : vector<8x128xf32> to vector<8x128xbf16>
    %c0_26 = arith.constant 0 : index
    %c0_27 = arith.constant 0 : index
    %56 = vector.load %arg7[%c0_26, %c0_27] : memref<128x512xbf16, #tpu.memory_space<vmem>>, vector<128x512xbf16>
    %cst_28 = arith.constant dense<0.000000e+00> : vector<8x512xf32>
    %57 = tpu.matmul %55, %56, %cst_28 {dimension_numbers = #tpu.dot_dimension_numbers<[1], [0], [0], [1], [0, 0, 1, 1], [], []>} : vector<8x128xbf16>, vector<128x512xbf16>, vector<8x512xf32> -> vector<8x512xf32>
    %c0_29 = arith.constant 0 : index
    %c0_30 = arith.constant 0 : index
    %58 = vector.load %arg8[%c0_29, %c0_30] : memref<1x512xf32, #tpu.memory_space<vmem>>, vector<1x512xf32>
    %59 = vector.broadcast %58 : vector<1x512xf32> to vector<8x512xf32>
    %60 = arith.addf %57, %59 : vector<8x512xf32>
    %c0_31 = arith.constant 0 : index
    %c0_32 = arith.constant 0 : index
    %61 = vector.load %arg10[%c0_31, %c0_32] : memref<8x512xf32, #tpu.memory_space<vmem>>, vector<8x512xf32>
    tpu.vector_store %arg10[%c0_31, %c0_32], %60 {strides = array<i32>} : memref<8x512xf32, #tpu.memory_space<vmem>>, vector<8x512xf32>,
    %62 = tpu.iota {dimensions = array<i32: 1>} : vector<8x512xi32>
    %63 = tpu.iota {dimensions = array<i32: 1>} : vector<8x128xi32>
    %c0_i32 = arith.constant 0 : i32
    %64 = vector.broadcast %c0_i32 : i32 to vector<8x128xi32>
    %cst_33 = arith.constant dense<0xFF800000> : vector<8xf32>
    %65 = vector.multi_reduction <maximumf>, %60, %cst_33 [1] : vector<8x512xf32> to vector<8xf32>
    %66 = vector.shape_cast %65 : vector<8xf32> to vector<8x1xf32>
    %67 = vector.broadcast %66 : vector<8x1xf32> to vector<8x512xf32>
    %68 = arith.cmpf oeq, %60, %67 : vector<8x512xf32>
    %c512_i32 = arith.constant 512 : i32
    %69 = vector.broadcast %c512_i32 : i32 to vector<8x512xi32>
    %70 = arith.select %68, %62, %69 : vector<8x512xi1>, vector<8x512xi32>
    %cst_34 = arith.constant dense<2147483647> : vector<8xi32>
    %71 = vector.multi_reduction <minsi>, %70, %cst_34 [1] : vector<8x512xi32> to vector<8xi32>
    %72 = vector.shape_cast %71 : vector<8xi32> to vector<8x1xi32>
    %c0_i32_35 = arith.constant 0 : i32
    %73 = vector.broadcast %c0_i32_35 : i32 to vector<8x128xi32>
    %74 = arith.cmpi eq, %63, %73 : vector<8x128xi32>
    %75 = vector.shape_cast %72 : vector<8x1xi32> to vector<8x1xi32>
    %76 = vector.broadcast %75 : vector<8x1xi32> to vector<8x128xi32>
    %77 = arith.select %74, %76, %64 : vector<8x128xi1>, vector<8x128xi32>
    %78 = vector.broadcast %72 : vector<8x1xi32> to vector<8x512xi32>
    %79 = arith.cmpi eq, %62, %78 : vector<8x512xi32>
    %cst_36 = arith.constant -1.000000e+30 : f32
    %80 = vector.broadcast %cst_36 : f32 to vector<8x512xf32>
    %81 = arith.select %79, %80, %60 : vector<8x512xi1>, vector<8x512xf32>
    %cst_37 = arith.constant dense<0xFF800000> : vector<8xf32>
    %82 = vector.multi_reduction <maximumf>, %81, %cst_37 [1] : vector<8x512xf32> to vector<8xf32>
    %83 = vector.shape_cast %82 : vector<8xf32> to vector<8x1xf32>
    %84 = vector.broadcast %83 : vector<8x1xf32> to vector<8x512xf32>
    %85 = arith.cmpf oeq, %81, %84 : vector<8x512xf32>
    %c512_i32_38 = arith.constant 512 : i32
    %86 = vector.broadcast %c512_i32_38 : i32 to vector<8x512xi32>
    %87 = arith.select %85, %62, %86 : vector<8x512xi1>, vector<8x512xi32>
    %cst_39 = arith.constant dense<2147483647> : vector<8xi32>
    %88 = vector.multi_reduction <minsi>, %87, %cst_39 [1] : vector<8x512xi32> to vector<8xi32>
    %89 = vector.shape_cast %88 : vector<8xi32> to vector<8x1xi32>
    %c1_i32 = arith.constant 1 : i32
    %90 = vector.broadcast %c1_i32 : i32 to vector<8x128xi32>
    %91 = arith.cmpi eq, %63, %90 : vector<8x128xi32>
    %92 = vector.shape_cast %89 : vector<8x1xi32> to vector<8x1xi32>
    %93 = vector.broadcast %92 : vector<8x1xi32> to vector<8x128xi32>
    %94 = arith.select %91, %93, %77 : vector<8x128xi1>, vector<8x128xi32>
    %95 = vector.broadcast %89 : vector<8x1xi32> to vector<8x512xi32>
    %96 = arith.cmpi eq, %62, %95 : vector<8x512xi32>
    %cst_40 = arith.constant -1.000000e+30 : f32
    %97 = vector.broadcast %cst_40 : f32 to vector<8x512xf32>
    %98 = arith.select %96, %97, %81 : vector<8x512xi1>, vector<8x512xf32>
    %cst_41 = arith.constant dense<0xFF800000> : vector<8xf32>
    %99 = vector.multi_reduction <maximumf>, %98, %cst_41 [1] : vector<8x512xf32> to vector<8xf32>
    %100 = vector.shape_cast %99 : vector<8xf32> to vector<8x1xf32>
    %101 = vector.broadcast %100 : vector<8x1xf32> to vector<8x512xf32>
    %102 = arith.cmpf oeq, %98, %101 : vector<8x512xf32>
    %c512_i32_42 = arith.constant 512 : i32
    %103 = vector.broadcast %c512_i32_42 : i32 to vector<8x512xi32>
    %104 = arith.select %102, %62, %103 : vector<8x512xi1>, vector<8x512xi32>
    %cst_43 = arith.constant dense<2147483647> : vector<8xi32>
    %105 = vector.multi_reduction <minsi>, %104, %cst_43 [1] : vector<8x512xi32> to vector<8xi32>
    %106 = vector.shape_cast %105 : vector<8xi32> to vector<8x1xi32>
    %c2_i32 = arith.constant 2 : i32
    %107 = vector.broadcast %c2_i32 : i32 to vector<8x128xi32>
    %108 = arith.cmpi eq, %63, %107 : vector<8x128xi32>
    %109 = vector.shape_cast %106 : vector<8x1xi32> to vector<8x1xi32>
    %110 = vector.broadcast %109 : vector<8x1xi32> to vector<8x128xi32>
    %111 = arith.select %108, %110, %94 : vector<8x128xi1>, vector<8x128xi32>
    %112 = vector.broadcast %106 : vector<8x1xi32> to vector<8x512xi32>
    %113 = arith.cmpi eq, %62, %112 : vector<8x512xi32>
    %cst_44 = arith.constant -1.000000e+30 : f32
    %114 = vector.broadcast %cst_44 : f32 to vector<8x512xf32>
    %115 = arith.select %113, %114, %98 : vector<8x512xi1>, vector<8x512xf32>
    %cst_45 = arith.constant dense<0xFF800000> : vector<8xf32>
    %116 = vector.multi_reduction <maximumf>, %115, %cst_45 [1] : vector<8x512xf32> to vector<8xf32>
    %117 = vector.shape_cast %116 : vector<8xf32> to vector<8x1xf32>
    %118 = vector.broadcast %117 : vector<8x1xf32> to vector<8x512xf32>
    %119 = arith.cmpf oeq, %115, %118 : vector<8x512xf32>
    %c512_i32_46 = arith.constant 512 : i32
    %120 = vector.broadcast %c512_i32_46 : i32 to vector<8x512xi32>
    %121 = arith.select %119, %62, %120 : vector<8x512xi1>, vector<8x512xi32>
    %cst_47 = arith.constant dense<2147483647> : vector<8xi32>
    %122 = vector.multi_reduction <minsi>, %121, %cst_47 [1] : vector<8x512xi32> to vector<8xi32>
    %123 = vector.shape_cast %122 : vector<8xi32> to vector<8x1xi32>
    %c3_i32 = arith.constant 3 : i32
    %124 = vector.broadcast %c3_i32 : i32 to vector<8x128xi32>
    %125 = arith.cmpi eq, %63, %124 : vector<8x128xi32>
    %126 = vector.shape_cast %123 : vector<8x1xi32> to vector<8x1xi32>
    %127 = vector.broadcast %126 : vector<8x1xi32> to vector<8x128xi32>
    %128 = arith.select %125, %127, %111 : vector<8x128xi1>, vector<8x128xi32>
    %129 = vector.broadcast %123 : vector<8x1xi32> to vector<8x512xi32>
    %130 = arith.cmpi eq, %62, %129 : vector<8x512xi32>
    %cst_48 = arith.constant -1.000000e+30 : f32
    %131 = vector.broadcast %cst_48 : f32 to vector<8x512xf32>
    %132 = arith.select %130, %131, %115 : vector<8x512xi1>, vector<8x512xf32>
    %cst_49 = arith.constant dense<0xFF800000> : vector<8xf32>
    %133 = vector.multi_reduction <maximumf>, %132, %cst_49 [1] : vector<8x512xf32> to vector<8xf32>
    %134 = vector.shape_cast %133 : vector<8xf32> to vector<8x1xf32>
    %135 = vector.broadcast %134 : vector<8x1xf32> to vector<8x512xf32>
    %136 = arith.cmpf oeq, %132, %135 : vector<8x512xf32>
    %c512_i32_50 = arith.constant 512 : i32
    %137 = vector.broadcast %c512_i32_50 : i32 to vector<8x512xi32>
    %138 = arith.select %136, %62, %137 : vector<8x512xi1>, vector<8x512xi32>
    %cst_51 = arith.constant dense<2147483647> : vector<8xi32>
    %139 = vector.multi_reduction <minsi>, %138, %cst_51 [1] : vector<8x512xi32> to vector<8xi32>
    %140 = vector.shape_cast %139 : vector<8xi32> to vector<8x1xi32>
    %c4_i32 = arith.constant 4 : i32
    %141 = vector.broadcast %c4_i32 : i32 to vector<8x128xi32>
    %142 = arith.cmpi eq, %63, %141 : vector<8x128xi32>
    %143 = vector.shape_cast %140 : vector<8x1xi32> to vector<8x1xi32>
    %144 = vector.broadcast %143 : vector<8x1xi32> to vector<8x128xi32>
    %145 = arith.select %142, %144, %128 : vector<8x128xi1>, vector<8x128xi32>
    %146 = vector.broadcast %140 : vector<8x1xi32> to vector<8x512xi32>
    %147 = arith.cmpi eq, %62, %146 : vector<8x512xi32>
    %cst_52 = arith.constant -1.000000e+30 : f32
    %148 = vector.broadcast %cst_52 : f32 to vector<8x512xf32>
    %149 = arith.select %147, %148, %132 : vector<8x512xi1>, vector<8x512xf32>
    %cst_53 = arith.constant dense<0xFF800000> : vector<8xf32>
    %150 = vector.multi_reduction <maximumf>, %149, %cst_53 [1] : vector<8x512xf32> to vector<8xf32>
    %151 = vector.shape_cast %150 : vector<8xf32> to vector<8x1xf32>
    %152 = vector.broadcast %151 : vector<8x1xf32> to vector<8x512xf32>
    %153 = arith.cmpf oeq, %149, %152 : vector<8x512xf32>
    %c512_i32_54 = arith.constant 512 : i32
    %154 = vector.broadcast %c512_i32_54 : i32 to vector<8x512xi32>
    %155 = arith.select %153, %62, %154 : vector<8x512xi1>, vector<8x512xi32>
    %cst_55 = arith.constant dense<2147483647> : vector<8xi32>
    %156 = vector.multi_reduction <minsi>, %155, %cst_55 [1] : vector<8x512xi32> to vector<8xi32>
    %157 = vector.shape_cast %156 : vector<8xi32> to vector<8x1xi32>
    %c5_i32 = arith.constant 5 : i32
    %158 = vector.broadcast %c5_i32 : i32 to vector<8x128xi32>
    %159 = arith.cmpi eq, %63, %158 : vector<8x128xi32>
    %160 = vector.shape_cast %157 : vector<8x1xi32> to vector<8x1xi32>
    %161 = vector.broadcast %160 : vector<8x1xi32> to vector<8x128xi32>
    %162 = arith.select %159, %161, %145 : vector<8x128xi1>, vector<8x128xi32>
    %163 = vector.broadcast %157 : vector<8x1xi32> to vector<8x512xi32>
    %164 = arith.cmpi eq, %62, %163 : vector<8x512xi32>
    %cst_56 = arith.constant -1.000000e+30 : f32
    %165 = vector.broadcast %cst_56 : f32 to vector<8x512xf32>
    %166 = arith.select %164, %165, %149 : vector<8x512xi1>, vector<8x512xf32>
    %cst_57 = arith.constant dense<0xFF800000> : vector<8xf32>
    %167 = vector.multi_reduction <maximumf>, %166, %cst_57 [1] : vector<8x512xf32> to vector<8xf32>
    %168 = vector.shape_cast %167 : vector<8xf32> to vector<8x1xf32>
    %169 = vector.broadcast %168 : vector<8x1xf32> to vector<8x512xf32>
    %170 = arith.cmpf oeq, %166, %169 : vector<8x512xf32>
    %c512_i32_58 = arith.constant 512 : i32
    %171 = vector.broadcast %c512_i32_58 : i32 to vector<8x512xi32>
    %172 = arith.select %170, %62, %171 : vector<8x512xi1>, vector<8x512xi32>
    %cst_59 = arith.constant dense<2147483647> : vector<8xi32>
    %173 = vector.multi_reduction <minsi>, %172, %cst_59 [1] : vector<8x512xi32> to vector<8xi32>
    %174 = vector.shape_cast %173 : vector<8xi32> to vector<8x1xi32>
    %c6_i32 = arith.constant 6 : i32
    %175 = vector.broadcast %c6_i32 : i32 to vector<8x128xi32>
    %176 = arith.cmpi eq, %63, %175 : vector<8x128xi32>
    %177 = vector.shape_cast %174 : vector<8x1xi32> to vector<8x1xi32>
    %178 = vector.broadcast %177 : vector<8x1xi32> to vector<8x128xi32>
    %179 = arith.select %176, %178, %162 : vector<8x128xi1>, vector<8x128xi32>
    %180 = vector.broadcast %174 : vector<8x1xi32> to vector<8x512xi32>
    %181 = arith.cmpi eq, %62, %180 : vector<8x512xi32>
    %cst_60 = arith.constant -1.000000e+30 : f32
    %182 = vector.broadcast %cst_60 : f32 to vector<8x512xf32>
    %183 = arith.select %181, %182, %166 : vector<8x512xi1>, vector<8x512xf32>
    %cst_61 = arith.constant dense<0xFF800000> : vector<8xf32>
    %184 = vector.multi_reduction <maximumf>, %183, %cst_61 [1] : vector<8x512xf32> to vector<8xf32>
    %185 = vector.shape_cast %184 : vector<8xf32> to vector<8x1xf32>
    %186 = vector.broadcast %185 : vector<8x1xf32> to vector<8x512xf32>
    %187 = arith.cmpf oeq, %183, %186 : vector<8x512xf32>
    %c512_i32_62 = arith.constant 512 : i32
    %188 = vector.broadcast %c512_i32_62 : i32 to vector<8x512xi32>
    %189 = arith.select %187, %62, %188 : vector<8x512xi1>, vector<8x512xi32>
    %cst_63 = arith.constant dense<2147483647> : vector<8xi32>
    %190 = vector.multi_reduction <minsi>, %189, %cst_63 [1] : vector<8x512xi32> to vector<8xi32>
    %191 = vector.shape_cast %190 : vector<8xi32> to vector<8x1xi32>
    %c7_i32 = arith.constant 7 : i32
    %192 = vector.broadcast %c7_i32 : i32 to vector<8x128xi32>
    %193 = arith.cmpi eq, %63, %192 : vector<8x128xi32>
    %194 = vector.shape_cast %191 : vector<8x1xi32> to vector<8x1xi32>
    %195 = vector.broadcast %194 : vector<8x1xi32> to vector<8x128xi32>
    %196 = arith.select %193, %195, %179 : vector<8x128xi1>, vector<8x128xi32>
    %c0_64 = arith.constant 0 : index
    %c0_65 = arith.constant 0 : index
    %197 = vector.load %arg9[%c0_64, %c0_65] : memref<8x128xi32, #tpu.memory_space<vmem>>, vector<8x128xi32>
    tpu.vector_store %arg9[%c0_64, %c0_65], %196 {strides = array<i32>} : memref<8x128xi32, #tpu.memory_space<vmem>>, vector<8x128xi32>,
    return
  }
}

</mosaic_0001>

<bundles_post_ra>
// kernel: tpu_custom_call.1
= control target key start
LH: loop header
LB: loop body
LE: loop exit
PB: predicated region body
PF: predicated region fallthrough
CT: control target
= control target key end

     0   :  { %16 = vsyncpa [#allocation3], 0  ;;  %s1548_s0 = inlined_call_operand.hbm [shape: f32[8,32], index: 0, kind: input, shape index: {}]   ;;  %s1549_s1 = inlined_call_operand.hbm [shape: bf16[32,128], index: 1, kind: input, shape index: {}]   ;;  %s1550_s2 = inlined_call_operand.vmem [shape: f32[1,128], index: 2, kind: input, shape index: {}]   ;;  %s1551_s3 = inlined_call_operand.vmem [shape: f32[1,128], index: 3, kind: input, shape index: {}]   ;;  %s1552_s4 = inlined_call_operand.hbm [shape: bf16[128,128], index: 4, kind: input, shape index: {}]   ;;  %s1553_s5 = inlined_call_operand.vmem [shape: f32[1,128], index: 5, kind: input, shape index: {}]   ;;  %s1554_s6 = inlined_call_operand.vmem [shape: f32[1,128], index: 6, kind: input, shape index: {}]   ;;  %s1555_s7 = inlined_call_operand.hbm [shape: bf16[128,512], index: 7, kind: input, shape index: {}]   ;;  %s1556_s8 = inlined_call_operand.vmem [shape: f32[1,512], index: 8, kind: input, shape index: {}]   ;;  %s1557_s9 = inlined_call_operand.hbm [shape: s32[8,128], index: 9, kind: output, shape index: {0}]   ;;  %s1558_s10 = inlined_call_operand.hbm [shape: f32[8,512], index: 10, kind: output, shape index: {1}]  }
   0x1   :  { %17 = vsyncpa [#allocation6], 0 }
   0x2   :  { %18 = vsyncpa [#allocation9], 0 }
   0x3   :  { %19 = vsyncpa [#allocation4], 0 }
   0x4   :  { %20 = vsyncpa [#allocation12], 0  ;;  %s1308_s13 = smov [#allocation5]   ;;  %s1166_s17 = scalar_lea.hbm %s1549_s1, 256 }
   0x5   :  { %s36_s14 = sshll.u32 %s1308_s13, 4  ;;  %p1167_p0 = scmp.ne.s32.totalorder %s1549_s1, %s1166_s17  ;;  %s37_s14 = int_to_ptr.vmem [resolvable:$true] %s36_s14 }
   0x6   :  { %p1170_p1 = scmp.lt.u32.totalorder %s1166_s17, %s1549_s1 }
   0x8   :  { %p1172_p2 = pnand %p1170_p1, %p1167_p0 }
   0xa   :  { %1175 = shalt.err (!%p1172_p2)
}
   0xb   :  { %s1176_s22 = scalar_lea.vmem %s37_s14, 256  ;;  %p1181_p4 = scmp.lt.s32.totalorder %s37_s14, %s37_s14 }
   0xc   :  { %p1177_p3 = scmp.ne.s32.totalorder %s37_s14, %s1176_s22  ;;  %p1182_p5 = scmp.lt.s32.totalorder %s1176_s22, %s1176_s22 }
   0xe   :  { %p1183_p6 = por %p1182_p5, %p1181_p4 }
  0x10   :  { %p1184_p7 = pnand %p1183_p6, %p1177_p3 }
  0x12   :  { %1187 = shalt.err (!%p1184_p7)
}
  0x13   :  { %s1309_s23 = smov 64   ;;  %s1310_s24 = smov 4  }
  0x14   :  { %42 = dma.hbm_to_vmem [thread:$0]  %s1549_s1, 256, %s37_s14, [#allocation6], %s1309_s23, %s1309_s23, %s1310_s24  }
  0x15   :  { %s1311_s27 = smov [#allocation2]   ;;  %s1312_s29 = smov [#allocation7]  }
  0x16   :  { %s27_s28 = sshll.u32 %s1311_s27, 4  ;;  %s52_s30 = sshll.u32 %s1312_s29, 4  ;;  %s28_s28 = int_to_ptr.vmem [resolvable:$true] %s27_s28  ;;  %s53_s30 = int_to_ptr.vmem [resolvable:$true] %s52_s30 }
  0x17   :  { %s1188_s13 = scalar_lea.hbm %s1548_s0, 128 }
  0x18   :  { %p1189_p8 = scmp.ne.s32.totalorder %s1548_s0, %s1188_s13  ;;  %p1192_p9 = scmp.lt.u32.totalorder %s1188_s13, %s1548_s0 }
  0x1a   :  { %p1194_p10 = pnand %p1192_p9, %p1189_p8 }
  0x1c   :  { %1197 = shalt.err (!%p1194_p10)
}
  0x1d   :  { %s1198_s1 = scalar_lea.vmem %s28_s28, 128  ;;  %p1203_p12 = scmp.lt.s32.totalorder %s28_s28, %s28_s28 }
  0x1e   :  { %p1199_p11 = scmp.ne.s32.totalorder %s28_s28, %s1198_s1  ;;  %p1204_p13 = scmp.lt.s32.totalorder %s1198_s1, %s1198_s1 }
  0x20   :  { %p1205_p0 = por %p1204_p13, %p1203_p12 }
  0x22   :  { %p1206_p1 = pnand %p1205_p0, %p1199_p11 }
  0x24   :  { %1209 = shalt.err (!%p1206_p1)
}
  0x25   :  { %30 = dma.hbm_to_vmem [thread:$0]  %s1548_s0, 128, %s28_s28, [#allocation3]  }
  0x26   :  { %s1210_s22 = scalar_lea.hbm %s1552_s4, 1024 }
  0x27   :  { %p1211_p2 = scmp.ne.s32.totalorder %s1552_s4, %s1210_s22  ;;  %p1214_p3 = scmp.lt.u32.totalorder %s1210_s22, %s1552_s4 }
  0x29   :  { %p1216_p4 = pnand %p1214_p3, %p1211_p2 }
  0x2b   :  { %1219 = shalt.err (!%p1216_p4)
}
  0x2c   :  { %s1220_s11 = scalar_lea.vmem %s53_s30, 1024  ;;  %p1225_p6 = scmp.lt.s32.totalorder %s53_s30, %s53_s30 }
  0x2d   :  { %p1221_p5 = scmp.ne.s32.totalorder %s53_s30, %s1220_s11  ;;  %p1226_p7 = scmp.lt.s32.totalorder %s1220_s11, %s1220_s11 }
  0x2f   :  { %p1227_p8 = por %p1226_p7, %p1225_p6 }
  0x31   :  { %p1228_p9 = pnand %p1227_p8, %p1221_p5 }
  0x33   :  { %1231 = shalt.err (!%p1228_p9)
}
  0x34   :  { %58 = dma.hbm_to_vmem [thread:$0]  %s1552_s4, 1024, %s53_s30, [#allocation6], %s1309_s23, %s1309_s23, %s1310_s24  }
  0x35   :  { %s1313_s12 = smov [#allocation8]   ;;  %s1232_s17 = scalar_lea.hbm %s1555_s7, 4096 }
  0x36   :  { %s68_s13 = sshll.u32 %s1313_s12, 4  ;;  %p1233_p10 = scmp.ne.s32.totalorder %s1555_s7, %s1232_s17  ;;  %s69_s13 = int_to_ptr.vmem [resolvable:$true] %s68_s13 }
  0x37   :  { %p1236_p11 = scmp.lt.u32.totalorder %s1232_s17, %s1555_s7 }
  0x39   :  { %p1238_p12 = pnand %p1236_p11, %p1233_p10 }
  0x3b   :  { %1241 = shalt.err (!%p1238_p12)
}
  0x3c   :  { %s1242_s20 = scalar_lea.vmem %s69_s13, 4096  ;;  %p1247_p0 = scmp.lt.s32.totalorder %s69_s13, %s69_s13 }
  0x3d   :  { %p1243_p13 = scmp.ne.s32.totalorder %s69_s13, %s1242_s20  ;;  %p1248_p1 = scmp.lt.s32.totalorder %s1242_s20, %s1242_s20 }
  0x3f   :  { %p1249_p2 = por %p1248_p1, %p1247_p0 }
  0x41   :  { %p1250_p3 = pnand %p1249_p2, %p1243_p13 }
  0x43   :  { %1253 = shalt.err (!%p1250_p3)
}
  0x44   :  { %s1314_s4 = smov 256   ;;  %s1315_s23 = smov 16  }
  0x45   :  { %74 = dma.hbm_to_vmem [thread:$0]  %s1555_s7, 4096, %s69_s13, [#allocation9], %s1314_s4, %s1314_s4, %s1315_s23  }
  0x46   :  { %1298 = dma.done.wait [#allocation3], 128  }
  0x47   :  { %1299 = vsyncadd [#allocation3], 4294967168 }
  0x48   :  { %1300 = dma.done.wait [#allocation6], 1280  }
  0x49   :  { %1301 = vsyncadd [#allocation6], 4294966016 }
  0x4a   :  { %1302 = dma.done.wait [#allocation9], 4096  }
  0x4b   :  { %1303 = vsyncadd [#allocation9], 4294963200  ;;  %v1316_v0 = vmov 0.0   ;;  %vm1317_vm0 = vmmov 0   ;;  %v1104_v1 = vld [vmem:[#allocation5] sm:$0xff]   ;;  %v1105_v2 = vld [vmem:[#allocation5 + $0x8] sm:$0xff]  }
  0x4c   :  { %1063 = vmatprep.subr.bf16.mxu0 %v1316_v0  ;;  %1067 = vmatprep.mubr.msk.bf16.mxu0 %vm1317_vm0, %v1316_v0  ;;  %v90_v3 = vld [vmem:[#allocation2] sm:$0xff]  ;;  %vm108_vm1 = vcmask 261120   ;;  %v1106_v5 = vld [vmem:[#allocation7] sm:$0xff]   ;;  %v1108_v7 = vld [vmem:[#allocation7 + $0x10] sm:$0xff]  }
  0x4d   :  { %1071 = vmatprep.subr.bf16.mxu1 %v1316_v0  ;;  %1087 = vmatprep.mubr.msk.bf16.mxu1 %vm1317_vm0, %v1316_v0  ;;  %v91_v4 = vpack.c.bf16 %v90_v3, %v90_v3  ;;  %v1107_v6 = vld [vmem:[#allocation7 + $0x8] sm:$0xff]   ;;  %v1109_v8 = vld [vmem:[#allocation7 + $0x18] sm:$0xff]   ;;  %v1110_v9 = vld [vmem:[#allocation7 + $0x20] sm:$0xff]  }
  0x4e   :  { %1064 = vmatpush3.bf16.msra.mxu0 %v1104_v1  ;;  %1072 = vmatpush3.bf16.msra.mxu1 %v1106_v5  ;;  %v1111_v10 = vld [vmem:[#allocation7 + $0x28] sm:$0xff]   ;;  %v1112_v11 = vld [vmem:[#allocation7 + $0x30] sm:$0xff]   ;;  %v1113_v12 = vld [vmem:[#allocation7 + $0x38] sm:$0xff]  }
  0x4f   :  { %1065 = vmatprep.subr.bf16.mxu0 %v1316_v0  ;;  %1073 = vmatprep.subr.bf16.mxu1 %v1316_v0  ;;  %v1007_v35 = vld [vmem:[%s1550_s2] ss:$0 sm:$0xff]  ;;  %v1116_v42 = vld [vmem:[#allocation8 + $0x4] ss:$16 sps:$4 sm:$0xff]   ;;  %v1119_v43 = vld [vmem:[#allocation8 + $0xc] ss:$16 sps:$4 sm:$0xff]  }
  0x50   :  { %v1008_v37 = vld [vmem:[%s1551_s3] ss:$0 sm:$0xff]  ;;  %v1114_v44 = vld [vmem:[#allocation8] ss:$16 sps:$4 sm:$0xff]   ;;  %v1122_v46 = vld [vmem:[#allocation8 + $0x24] ss:$16 sps:$4 sm:$0xff]  }
  0x51   :  { %v1117_v45 = vld [vmem:[#allocation8 + $0x8] ss:$16 sps:$4 sm:$0xff]   ;;  %v1125_v47 = vld [vmem:[#allocation8 + $0x2c] ss:$16 sps:$4 sm:$0xff]   ;;  %v1120_v48 = vld [vmem:[#allocation8 + $0x20] ss:$16 sps:$4 sm:$0xff]  }
  0x52   :  { %1066 = vmatpush3.bf16.msra.mxu0 %v1105_v2  ;;  %1074 = vmatpush3.bf16.msra.mxu1 %v1107_v6  ;;  %v1123_v49 = vld [vmem:[#allocation8 + $0x28] ss:$16 sps:$4 sm:$0xff]   ;;  %v1128_v50 = vld [vmem:[#allocation8 + $0x44] ss:$16 sps:$4 sm:$0xff]   ;;  %v1131_v51 = vld [vmem:[#allocation8 + $0x4c] ss:$16 sps:$4 sm:$0xff]  }
  0x53   :  { %1075 = vmatprep.subr.bf16.mxu1 %v1316_v0  ;;  %545 = vmatprep.subr.bf16.mxu0 %v1116_v42  ;;  %v1126_v52 = vld [vmem:[#allocation8 + $0x40] ss:$16 sps:$4 sm:$0xff]   ;;  %v1129_v53 = vld [vmem:[#allocation8 + $0x48] ss:$16 sps:$4 sm:$0xff]   ;;  %v1134_v54 = vld [vmem:[#allocation8 + $0x64] ss:$16 sps:$4 sm:$0xff]  }
  0x54   :  { %v1137_v55 = vld [vmem:[#allocation8 + $0x6c] ss:$16 sps:$4 sm:$0xff]   ;;  %v1132_v56 = vld [vmem:[#allocation8 + $0x60] ss:$16 sps:$4 sm:$0xff]   ;;  %v1135_v57 = vld [vmem:[#allocation8 + $0x68] ss:$16 sps:$4 sm:$0xff]  }
  0x55   :  { %1068 = vmatmul.mubr.msk.bf16.vlgmr.msra.gmra.mrb[0].mxu0 %vm108_vm1, %v91_v4  ;;  %v1140_v58 = vld [vmem:[#allocation8 + $0x84] ss:$16 sps:$4 sm:$0xff]   ;;  %v1143_v59 = vld [vmem:[#allocation8 + $0x8c] ss:$16 sps:$4 sm:$0xff]   ;;  %v1138_v60 = vld [vmem:[#allocation8 + $0x80] ss:$16 sps:$4 sm:$0xff]  }
  0x56   :  { %1076 = vmatpush3.bf16.msra.mxu1 %v1108_v7  ;;  %546 = vmatpush1.bf16.msra.mxu0 %v1114_v44  ;;  %v1141_v61 = vld [vmem:[#allocation8 + $0x88] ss:$16 sps:$4 sm:$0xff]   ;;  %v1146_v62 = vld [vmem:[#allocation8 + $0xa4] ss:$16 sps:$4 sm:$0xff]   ;;  %v1149_v63 = vld [vmem:[#allocation8 + $0xac] ss:$16 sps:$4 sm:$0xff]  }
  0x57   :  { %1077 = vmatprep.subr.bf16.mxu1 %v1316_v0  ;;  %547 = vmatprep.subr.bf16.mxu0 %v1122_v46  ;;  %v1147_v1 = vld [vmem:[#allocation8 + $0xa8] ss:$16 sps:$4 sm:$0xff]   ;;  %v1152_v2 = vld [vmem:[#allocation8 + $0xc4] ss:$16 sps:$4 sm:$0xff]   ;;  %v1155_v3 = vld [vmem:[#allocation8 + $0xcc] ss:$16 sps:$4 sm:$0xff]  }
  0x58   :  { %v1150_v4 = vld [vmem:[#allocation8 + $0xc0] ss:$16 sps:$4 sm:$0xff]   ;;  %v1153_v5 = vld [vmem:[#allocation8 + $0xc8] ss:$16 sps:$4 sm:$0xff]   ;;  %v1158_v7 = vld [vmem:[#allocation8 + $0xe4] ss:$16 sps:$4 sm:$0xff]  }
  0x59   :  { %v1156_v6 = vld [vmem:[#allocation8 + $0xe0] ss:$16 sps:$4 sm:$0xff]   ;;  %v363_v44 = vld [vmem:[%s1556_s8] sm:$0xf] }
  0x5a   :  { %1078 = vmatpush3.bf16.msra.mxu1 %v1109_v8  ;;  %548 = vmatpush1.bf16.msra.mxu0 %v1120_v48  ;;  %v1159_v8 = vld [vmem:[#allocation8 + $0xe8] ss:$16 sps:$4 sm:$0xff]  }
  0x5b   :  { %1079 = vmatprep.subr.bf16.mxu1 %v1316_v0  ;;  %549 = vmatprep.subr.bf16.mxu0 %v1128_v50 }
  0x5e   :  { %1080 = vmatpush3.bf16.msra.mxu1 %v1110_v9  ;;  %550 = vmatpush1.bf16.msra.mxu0 %v1126_v52  ;;  %v1161_v9 = vld [vmem:[#allocation8 + $0xec] ss:$16 sps:$4 sm:$0xff]  }
  0x5f   :  { %1081 = vmatprep.subr.bf16.mxu1 %v1316_v0  ;;  %551 = vmatprep.subr.bf16.mxu0 %v1134_v54 }
  0x62   :  { %1082 = vmatpush3.bf16.msra.mxu1 %v1111_v10  ;;  %552 = vmatpush1.bf16.msra.mxu0 %v1132_v56  ;;  %v1318_v10 = vmov 0  }
  0x63   :  { %1083 = vmatprep.subr.bf16.mxu1 %v1316_v0  ;;  %553 = vmatprep.subr.bf16.mxu0 %v1140_v58 }
  0x64   :  { %577 = vmatprep.mubr.bf16.mxu0 %v1318_v10 }
  0x66   :  { %1084 = vmatpush3.bf16.msra.mxu1 %v1112_v11  ;;  %554 = vmatpush1.bf16.msra.mxu0 %v1138_v60 }
  0x67   :  { %1085 = vmatprep.subr.bf16.mxu1 %v1316_v0  ;;  %v1144_v0 = vld [vmem:[#allocation8 + $0xa0] ss:$16 sps:$4 sm:$0xff]   ;;  %555 = vmatprep.subr.bf16.mxu0 %v1146_v62 }
  0x6a   :  { %1086 = vmatpush3.bf16.msra.mxu1 %v1113_v12  ;;  %556 = vmatpush1.bf16.msra.mxu0 %v1144_v0 }
  0x6b   :  { %586 = vmatprep.subr.bf16.mxu1 %v1119_v43  ;;  %557 = vmatprep.subr.bf16.mxu0 %v1152_v2 }
  0x6e   :  { %558 = vmatpush1.bf16.msra.mxu0 %v1150_v4 }
  0x6f   :  { %559 = vmatprep.subr.bf16.mxu0 %v1158_v7 }
  0x72   :  { %560 = vmatpush1.bf16.msra.mxu0 %v1156_v6 }
 0x128   :  { %v146_v13 = vpop.f32.mrb[0].mxu0 }
 0x129   :  { %v152_v14 = vrot.slane %v146_v13, 4  ;;  %v1069_v15 = vpop.f32.mrb[1].mxu0 }
 0x12a   :  { %v149_v16 = vpop.f32.mrb[2].mxu0 }
 0x12b   :  { %v153_v17 = vadd.f32 %v152_v14, %v146_v13  ;;  %v1070_v18 = vpop.f32.mrb[3].mxu0 }
 0x12d   :  { %v154_v19 = vrot.slane %v153_v17, 2 }
 0x12f   :  { %v155_v20 = vadd.f32 %v154_v19, %v153_v17 }
 0x131   :  { %v156_v21 = vrot.slane %v155_v20, 1 }
 0x133   :  { %v157_v22 = vadd.f32 %v156_v21, %v155_v20 }
 0x135   :  { %v159_v23 = vmul.f32 0.125, %v157_v22 }
 0x137   :  { %v160_v24 = vsub.f32 %v146_v13, %v159_v23 }
 0x139   :  { %v161_v25 = vmul.f32 %v160_v24, %v160_v24 }
 0x13b   :  { %v162_v26 = vrot.slane %v161_v25, 4 }
 0x13d   :  { %v163_v27 = vadd.f32 %v162_v26, %v161_v25 }
 0x13f   :  { %v164_v28 = vrot.slane %v163_v27, 2 }
 0x141   :  { %v165_v29 = vadd.f32 %v164_v28, %v163_v27 }
 0x143   :  { %v166_v30 = vrot.slane %v165_v29, 1 }
 0x145   :  { %v167_v31 = vadd.f32 %v166_v30, %v165_v29 }
 0x147   :  { %v168_v32 = vmul.f32 0.125, %v167_v31 }
 0x149   :  { %v169_v33 = vadd.f32 1e-05, %v168_v32 }
 0x14b   :  { %1162 = vrsqrt.f32 %v169_v33  ;;  %v1017_v33 = vld [vmem:[%s1553_s5] ss:$0 sm:$0xff]  ;;  %s1319_s5 = smov [#allocation11]  }
 0x155   :  { %v1163_v34 = vpop.eup %1162 }
 0x156   :  { %v171_v36 = vmul.f32 %v1163_v34, %v160_v24 }
 0x158   :  { %v179_v38 = vmul.f32 %v1007_v35, %v171_v36  ;;  %v1018_v35 = vld [vmem:[%s1554_s6] ss:$0 sm:$0xff]  ;;  %s989_s6 = sshll.u32 %s1319_s5, 4  ;;  %s990_s6 = int_to_ptr.vmem [resolvable:$true] %s989_s6 }
 0x159   :  { %s1254_s8 = scalar_lea.vmem %s990_s6, 512  ;;  %p1259_p5 = scmp.lt.s32.totalorder %s990_s6, %s990_s6 }
 0x15a   :  { %v187_v39 = vadd.f32 %v1008_v37, %v179_v38  ;;  %p1255_p4 = scmp.ne.s32.totalorder %s990_s6, %s1254_s8  ;;  %p1260_p6 = scmp.lt.s32.totalorder %s1254_s8, %s1254_s8 }
 0x15c   :  { %v188_v40 = vmax.f32 %v187_v39, 0.0  ;;  %p1261_p7 = por %p1260_p6, %p1259_p5 }
 0x15e   :  { %v189_v41 = vpack.c.bf16 %v188_v40, %v188_v40  ;;  %v365_v40 = vlaneseq  ;;  %p1262_p8 = pnand %p1261_p7, %p1255_p4 }
 0x160   :  { %1088 = vmatmul.mubr.bf16.vlgmr.msra.gmra.mrb[0].mxu1 %v189_v41  ;;  %v366_v41 = vshrl.u32 %v365_v40, 7  ;;  %v1445_v2 = vand.u32 127, %v365_v40 }
 0x161   :  { %587 = vmatpush1.bf16.msra.mxu1 %v1117_v45  ;;  %618 = vmatprep.mubr.bf16.mxu1 %v1318_v10 }
 0x162   :  { %588 = vmatprep.subr.bf16.mxu1 %v1125_v47  ;;  %v367_v42 = vsub.s32 0, %v366_v41  ;;  %v375_v43 = vsub.s32 2, %v366_v41  ;;  %v371_v45 = vsub.s32 1, %v366_v41  ;;  %v379_v46 = vsub.s32 3, %v366_v41 }
 0x163   :  { %v1451_v4 = vadd.s32 256, %v1445_v2 }
 0x164   :  { %v368_v47 = vrot.slane %v363_v44, %v367_v42  ;;  %v376_v48 = vrot.slane %v363_v44, %v375_v43  ;;  %v380_v50 = vrot.slane %v363_v44, %v379_v46 }
 0x165   :  { %589 = vmatpush1.bf16.msra.mxu1 %v1123_v49  ;;  %v372_v49 = vrot.slane %v363_v44, %v371_v45 }
 0x166   :  { %590 = vmatprep.subr.bf16.mxu1 %v1131_v51 }
 0x169   :  { %591 = vmatpush1.bf16.msra.mxu1 %v1129_v53 }
 0x16a   :  { %592 = vmatprep.subr.bf16.mxu1 %v1137_v55 }
 0x16d   :  { %593 = vmatpush1.bf16.msra.mxu1 %v1135_v57 }
 0x16e   :  { %594 = vmatprep.subr.bf16.mxu1 %v1143_v59 }
 0x171   :  { %595 = vmatpush1.bf16.msra.mxu1 %v1141_v61 }
 0x172   :  { %596 = vmatprep.subr.bf16.mxu1 %v1149_v63 }
 0x175   :  { %597 = vmatpush1.bf16.msra.mxu1 %v1147_v1 }
 0x176   :  { %598 = vmatprep.subr.bf16.mxu1 %v1155_v3  ;;  %v1448_v3 = vadd.s32 128, %v1445_v2 }
 0x179   :  { %599 = vmatpush1.bf16.msra.mxu1 %v1153_v5  ;;  %v1454_v5 = vadd.s32 384, %v1445_v2 }
 0x17a   :  { %600 = vmatprep.subr.bf16.mxu1 %v1161_v9 }
 0x17d   :  { %601 = vmatpush1.bf16.msra.mxu1 %v1159_v8 }
 0x233   :  { %v288_v11 = vpop.f32.mrb[0].mxu1 }
 0x234   :  { %v294_v12 = vrot.slane %v288_v11, 4  ;;  %v1089_v13 = vpop.f32.mrb[1].mxu1 }
 0x235   :  { %v291_v14 = vpop.f32.mrb[2].mxu1 }
 0x236   :  { %v295_v15 = vadd.f32 %v294_v12, %v288_v11  ;;  %v1090_v16 = vpop.f32.mrb[3].mxu1 }
 0x238   :  { %v296_v17 = vrot.slane %v295_v15, 2 }
 0x23a   :  { %v297_v18 = vadd.f32 %v296_v17, %v295_v15 }
 0x23c   :  { %v298_v19 = vrot.slane %v297_v18, 1 }
 0x23e   :  { %v299_v20 = vadd.f32 %v298_v19, %v297_v18 }
 0x240   :  { %v300_v21 = vmul.f32 0.125, %v299_v20 }
 0x242   :  { %v301_v22 = vsub.f32 %v288_v11, %v300_v21 }
 0x244   :  { %v302_v23 = vmul.f32 %v301_v22, %v301_v22 }
 0x246   :  { %v303_v24 = vrot.slane %v302_v23, 4 }
 0x248   :  { %v304_v25 = vadd.f32 %v303_v24, %v302_v23 }
 0x24a   :  { %v305_v26 = vrot.slane %v304_v25, 2 }
 0x24c   :  { %v306_v27 = vadd.f32 %v305_v26, %v304_v25 }
 0x24e   :  { %v307_v28 = vrot.slane %v306_v27, 1 }
 0x250   :  { %v308_v29 = vadd.f32 %v307_v28, %v306_v27 }
 0x252   :  { %v309_v30 = vmul.f32 0.125, %v308_v29 }
 0x254   :  { %v310_v31 = vadd.f32 1e-05, %v309_v30 }
 0x256   :  { %1164 = vrsqrt.f32 %v310_v31 }
 0x260   :  { %v1165_v32 = vpop.eup %1164 }
 0x261   :  { %v312_v34 = vmul.f32 %v1165_v32, %v301_v22 }
 0x263   :  { %v320_v36 = vmul.f32 %v1017_v33, %v312_v34 }
 0x265   :  { %v328_v37 = vadd.f32 %v1018_v35, %v320_v36 }
 0x267   :  { %v329_v38 = vmax.f32 %v328_v37, 0.0 }
 0x269   :  { %v330_v39 = vpack.c.bf16 %v329_v38, %v329_v38 }
 0x26b   :  { %578 = vmatmul.mubr.bf16.vlgmr.msra.gmra.mrb[4].mxu0 %v330_v39  ;;  %619 = vmatmul.mubr.bf16.vlgmr.msra.gmra.mrb[4].mxu1 %v330_v39 }
 0x33e   :  { %v579_v51 = vpop.f32.mrb[4].mxu0  ;;  %v620_v52 = vpop.f32.mrb[4].mxu1 }
 0x33f   :  { %v580_v53 = vadd.f32 %v579_v51, %v368_v47  ;;  %v621_v54 = vadd.f32 %v620_v52, %v376_v48  ;;  %v581_v55 = vpop.f32.mrb[5].mxu0  ;;  %v622_v56 = vpop.f32.mrb[5].mxu1 }
 0x340   :  { %v582_v57 = vadd.f32 %v581_v55, %v372_v49  ;;  %v623_v58 = vadd.f32 %v622_v56, %v380_v50  ;;  %v583_v59 = vpop.f32.mrb[6].mxu0  ;;  %v624_v60 = vpop.f32.mrb[6].mxu1 }
 0x341   :  { %627 = vst [vmem:[#allocation11] sm:$0xff] %v580_v53  ;;  %629 = vst [vmem:[#allocation11 + $0x10] sm:$0xff] %v621_v54  ;;  %v584_v61 = vpop.f32.mrb[7].mxu0  ;;  %v625_v62 = vpop.f32.mrb[7].mxu1 }
 0x342   :  { %628 = vst [vmem:[#allocation11 + $0x8] sm:$0xff] %v582_v57  ;;  %630 = vst [vmem:[#allocation11 + $0x18] sm:$0xff] %v623_v58  ;;  %v636_v63 = vmax.f32 %v580_v53, %v582_v57  ;;  %v637_v0 = vmax.f32 %v621_v54, %v623_v58 }
 0x344   :  { %v638_v1 = vmax.f32 %v636_v63, %v637_v0 }
 0x346   :  { %639 = vmax.xlane.f32.xlu0 %v638_v1 }
 0x3d3   :  { %v640_v6 = vpop.xlane.xlu0 %639 }
 0x3d4   :  { %vm641_vm2 = vcmp.eq.f32.partialorder %v580_v53, %v640_v6  ;;  %vm642_vm3 = vcmp.eq.f32.partialorder %v582_v57, %v640_v6  ;;  %vm643_vm4 = vcmp.eq.f32.partialorder %v621_v54, %v640_v6  ;;  %vm644_vm5 = vcmp.eq.f32.partialorder %v623_v58, %v640_v6 }
 0x3d5   :  { %v645_v7 = vsel %vm641_vm2, %v1445_v2, 512  ;;  %v646_v8 = vsel %vm642_vm3, %v1448_v3, 512  ;;  %v647_v9 = vsel %vm643_vm4, %v1451_v4, 512  ;;  %v648_v10 = vsel %vm644_vm5, %v1454_v5, 512 }
 0x3d6   :  { %vm649_vm6 = vcmp.lt.s32.totalorder %v645_v7, %v646_v8  ;;  %vm651_vm7 = vcmp.lt.s32.totalorder %v647_v9, %v648_v10 }
 0x3d7   :  { %v650_v11 = vsel %vm649_vm6, %v645_v7, %v646_v8  ;;  %v652_v12 = vsel %vm651_vm7, %v647_v9, %v648_v10  ;;  %vm669_vm6 = vcmp.eq.s32.totalorder %v1445_v2, 0  ;;  %vm712_vm7 = vcmp.eq.s32.totalorder %v1445_v2, 1 }
 0x3d8   :  { %vm653_vm8 = vcmp.lt.s32.totalorder %v650_v11, %v652_v12 }
 0x3d9   :  { %v654_v13 = vsel %vm653_vm8, %v650_v11, %v652_v12 }
 0x3da   :  { %v656_v14 = vshra.s32 %v654_v13, 16  ;;  %v655_v16 = vand.u32 65535, %v654_v13 }
 0x3dc   :  { %v658_v15 = vcvt.s32.f32 %v656_v14  ;;  %v657_v18 = vcvt.s32.f32 %v655_v16 }
 0x3de   :  { %659 = vmin.xlane.f32.xlu0 %v658_v15 }
 0x46b   :  { %v660_v17 = vpop.xlane.xlu0 %659 }
 0x46c   :  { %vm661_vm9 = vcmp.eq.f32.partialorder %v658_v15, %v660_v17  ;;  %v666_v20 = vcvt.f32.s32 %v660_v17 }
 0x46d   :  { %v662_v19 = vsel %vm661_vm9, %v657_v18, inf }
 0x46e   :  { %663 = vmin.xlane.f32.xlu1 %v662_v19  ;;  %v667_v22 = vshll.u32 %v666_v20, 16 }
 0x4fb   :  { %v664_v21 = vpop.xlane.xlu1 %663 }
 0x4fc   :  { %v665_v23 = vcvt.f32.s32 %v664_v21 }
 0x4fe   :  { %v668_v24 = vadd.s32 %v667_v22, %v665_v23 }
 0x500   :  { %vm671_vm10 = vcmp.eq.s32.totalorder %v1445_v2, %v668_v24  ;;  %vm672_vm11 = vcmp.eq.s32.totalorder %v1448_v3, %v668_v24  ;;  %vm673_vm12 = vcmp.eq.s32.totalorder %v1451_v4, %v668_v24  ;;  %vm674_vm13 = vcmp.eq.s32.totalorder %v1454_v5, %v668_v24 }
 0x501   :  { %v675_v25 = vsel %vm671_vm10, -1e+30, %v580_v53  ;;  %v676_v26 = vsel %vm672_vm11, -1e+30, %v582_v57  ;;  %v677_v27 = vsel %vm673_vm12, -1e+30, %v621_v54 }
 0x502   :  { %v678_v28 = vsel %vm674_vm13, -1e+30, %v623_v58  ;;  %v679_v29 = vmax.f32 %v675_v25, %v676_v26  ;;  %v670_v51 = vsel %vm669_vm6, %v668_v24, 0 }
 0x503   :  { %v680_v30 = vmax.f32 %v677_v27, %v678_v28 }
 0x505   :  { %v681_v31 = vmax.f32 %v679_v29, %v680_v30 }
 0x507   :  { %682 = vmax.xlane.f32.xlu1 %v681_v31 }
 0x594   :  { %v683_v32 = vpop.xlane.xlu1 %682 }
 0x595   :  { %vm684_vm14 = vcmp.eq.f32.partialorder %v675_v25, %v683_v32  ;;  %vm685_vm15 = vcmp.eq.f32.partialorder %v676_v26, %v683_v32  ;;  %vm686_vm0 = vcmp.eq.f32.partialorder %v677_v27, %v683_v32  ;;  %vm687_vm1 = vcmp.eq.f32.partialorder %v678_v28, %v683_v32 }
 0x596   :  { %v688_v33 = vsel %vm684_vm14, %v1445_v2, 512  ;;  %v689_v34 = vsel %vm685_vm15, %v1448_v3, 512  ;;  %v690_v35 = vsel %vm686_vm0, %v1451_v4, 512  ;;  %v691_v36 = vsel %vm687_vm1, %v1454_v5, 512 }
 0x597   :  { %vm692_vm2 = vcmp.lt.s32.totalorder %v688_v33, %v689_v34  ;;  %vm694_vm3 = vcmp.lt.s32.totalorder %v690_v35, %v691_v36 }
 0x598   :  { %v693_v37 = vsel %vm692_vm2, %v688_v33, %v689_v34  ;;  %v695_v38 = vsel %vm694_vm3, %v690_v35, %v691_v36 }
 0x599   :  { %vm696_vm4 = vcmp.lt.s32.totalorder %v693_v37, %v695_v38 }
 0x59a   :  { %v697_v39 = vsel %vm696_vm4, %v693_v37, %v695_v38  ;;  %vm755_vm4 = vcmp.eq.s32.totalorder %v1445_v2, 2 }
 0x59b   :  { %v699_v40 = vshra.s32 %v697_v39, 16  ;;  %v698_v42 = vand.u32 65535, %v697_v39 }
 0x59d   :  { %v701_v41 = vcvt.s32.f32 %v699_v40  ;;  %v700_v44 = vcvt.s32.f32 %v698_v42 }
 0x59f   :  { %702 = vmin.xlane.f32.xlu0 %v701_v41 }
 0x62c   :  { %v703_v43 = vpop.xlane.xlu0 %702 }
 0x62d   :  { %vm704_vm5 = vcmp.eq.f32.partialorder %v701_v41, %v703_v43  ;;  %v709_v46 = vcvt.f32.s32 %v703_v43 }
 0x62e   :  { %v705_v45 = vsel %vm704_vm5, %v700_v44, inf }
 0x62f   :  { %706 = vmin.xlane.f32.xlu1 %v705_v45  ;;  %v710_v48 = vshll.u32 %v709_v46, 16 }
 0x6bc   :  { %v707_v47 = vpop.xlane.xlu1 %706 }
 0x6bd   :  { %v708_v49 = vcvt.f32.s32 %v707_v47 }
 0x6bf   :  { %v711_v50 = vadd.s32 %v710_v48, %v708_v49 }
 0x6c1   :  { %v713_v52 = vsel %vm712_vm7, %v711_v50, %v670_v51  ;;  %vm714_vm8 = vcmp.eq.s32.totalorder %v1445_v2, %v711_v50  ;;  %vm715_vm9 = vcmp.eq.s32.totalorder %v1448_v3, %v711_v50  ;;  %vm716_vm10 = vcmp.eq.s32.totalorder %v1451_v4, %v711_v50 }
 0x6c2   :  { %vm717_vm11 = vcmp.eq.s32.totalorder %v1454_v5, %v711_v50  ;;  %v718_v53 = vsel %vm714_vm8, -1e+30, %v675_v25  ;;  %v719_v54 = vsel %vm715_vm9, -1e+30, %v676_v26  ;;  %v720_v55 = vsel %vm716_vm10, -1e+30, %v677_v27 }
 0x6c3   :  { %v721_v56 = vsel %vm717_vm11, -1e+30, %v678_v28  ;;  %v722_v57 = vmax.f32 %v718_v53, %v719_v54 }
 0x6c4   :  { %v723_v58 = vmax.f32 %v720_v55, %v721_v56 }
 0x6c6   :  { %v724_v59 = vmax.f32 %v722_v57, %v723_v58 }
 0x6c8   :  { %725 = vmax.xlane.f32.xlu0 %v724_v59 }
 0x755   :  { %v726_v60 = vpop.xlane.xlu0 %725 }
 0x756   :  { %vm727_vm12 = vcmp.eq.f32.partialorder %v718_v53, %v726_v60  ;;  %vm728_vm13 = vcmp.eq.f32.partialorder %v719_v54, %v726_v60  ;;  %vm729_vm14 = vcmp.eq.f32.partialorder %v720_v55, %v726_v60  ;;  %vm730_vm15 = vcmp.eq.f32.partialorder %v721_v56, %v726_v60 }
 0x757   :  { %v731_v61 = vsel %vm727_vm12, %v1445_v2, 512  ;;  %v732_v62 = vsel %vm728_vm13, %v1448_v3, 512  ;;  %v733_v63 = vsel %vm729_vm14, %v1451_v4, 512  ;;  %v734_v0 = vsel %vm730_vm15, %v1454_v5, 512 }
 0x758   :  { %vm735_vm0 = vcmp.lt.s32.totalorder %v731_v61, %v732_v62  ;;  %vm737_vm1 = vcmp.lt.s32.totalorder %v733_v63, %v734_v0 }
 0x759   :  { %v736_v1 = vsel %vm735_vm0, %v731_v61, %v732_v62  ;;  %v738_v6 = vsel %vm737_vm1, %v733_v63, %v734_v0  ;;  %vm798_vm1 = vcmp.eq.s32.totalorder %v1445_v2, 3 }
 0x75a   :  { %vm739_vm2 = vcmp.lt.s32.totalorder %v736_v1, %v738_v6 }
 0x75b   :  { %v740_v7 = vsel %vm739_vm2, %v736_v1, %v738_v6 }
 0x75c   :  { %v742_v8 = vshra.s32 %v740_v7, 16  ;;  %v741_v10 = vand.u32 65535, %v740_v7 }
 0x75e   :  { %v744_v9 = vcvt.s32.f32 %v742_v8  ;;  %v743_v12 = vcvt.s32.f32 %v741_v10 }
 0x760   :  { %745 = vmin.xlane.f32.xlu1 %v744_v9 }
 0x7ed   :  { %v746_v11 = vpop.xlane.xlu1 %745 }
 0x7ee   :  { %vm747_vm3 = vcmp.eq.f32.partialorder %v744_v9, %v746_v11  ;;  %v752_v14 = vcvt.f32.s32 %v746_v11 }
 0x7ef   :  { %v748_v13 = vsel %vm747_vm3, %v743_v12, inf }
 0x7f0   :  { %749 = vmin.xlane.f32.xlu0 %v748_v13  ;;  %v753_v16 = vshll.u32 %v752_v14, 16 }
 0x87d   :  { %v750_v15 = vpop.xlane.xlu0 %749 }
 0x87e   :  { %v751_v17 = vcvt.f32.s32 %v750_v15 }
 0x880   :  { %v754_v18 = vadd.s32 %v753_v16, %v751_v17 }
 0x882   :  { %vm757_vm5 = vcmp.eq.s32.totalorder %v1445_v2, %v754_v18  ;;  %vm758_vm6 = vcmp.eq.s32.totalorder %v1448_v3, %v754_v18  ;;  %vm759_vm7 = vcmp.eq.s32.totalorder %v1451_v4, %v754_v18  ;;  %vm760_vm8 = vcmp.eq.s32.totalorder %v1454_v5, %v754_v18 }
 0x883   :  { %v761_v19 = vsel %vm757_vm5, -1e+30, %v718_v53  ;;  %v762_v20 = vsel %vm758_vm6, -1e+30, %v719_v54  ;;  %v763_v21 = vsel %vm759_vm7, -1e+30, %v720_v55  ;;  %v756_v22 = vsel %vm755_vm4, %v754_v18, %v713_v52 }
 0x884   :  { %v764_v23 = vsel %vm760_vm8, -1e+30, %v721_v56  ;;  %v765_v24 = vmax.f32 %v761_v19, %v762_v20 }
 0x885   :  { %v766_v25 = vmax.f32 %v763_v21, %v764_v23 }
 0x887   :  { %v767_v26 = vmax.f32 %v765_v24, %v766_v25 }
 0x889   :  { %768 = vmax.xlane.f32.xlu1 %v767_v26 }
 0x916   :  { %v769_v27 = vpop.xlane.xlu1 %768 }
 0x917   :  { %vm770_vm9 = vcmp.eq.f32.partialorder %v761_v19, %v769_v27  ;;  %vm771_vm10 = vcmp.eq.f32.partialorder %v762_v20, %v769_v27  ;;  %vm772_vm11 = vcmp.eq.f32.partialorder %v763_v21, %v769_v27  ;;  %vm773_vm12 = vcmp.eq.f32.partialorder %v764_v23, %v769_v27 }
 0x918   :  { %v774_v28 = vsel %vm770_vm9, %v1445_v2, 512  ;;  %v775_v29 = vsel %vm771_vm10, %v1448_v3, 512  ;;  %v776_v30 = vsel %vm772_vm11, %v1451_v4, 512  ;;  %v777_v31 = vsel %vm773_vm12, %v1454_v5, 512 }
 0x919   :  { %vm778_vm13 = vcmp.lt.s32.totalorder %v774_v28, %v775_v29  ;;  %vm780_vm14 = vcmp.lt.s32.totalorder %v776_v30, %v777_v31 }
 0x91a   :  { %v779_v32 = vsel %vm778_vm13, %v774_v28, %v775_v29  ;;  %v781_v33 = vsel %vm780_vm14, %v776_v30, %v777_v31  ;;  %vm841_vm14 = vcmp.eq.s32.totalorder %v1445_v2, 4 }
 0x91b   :  { %vm782_vm15 = vcmp.lt.s32.totalorder %v779_v32, %v781_v33 }
 0x91c   :  { %v783_v34 = vsel %vm782_vm15, %v779_v32, %v781_v33 }
 0x91d   :  { %v785_v35 = vshra.s32 %v783_v34, 16  ;;  %v784_v37 = vand.u32 65535, %v783_v34 }
 0x91f   :  { %v787_v36 = vcvt.s32.f32 %v785_v35  ;;  %v786_v39 = vcvt.s32.f32 %v784_v37 }
 0x921   :  { %788 = vmin.xlane.f32.xlu0 %v787_v36 }
 0x9ae   :  { %v789_v38 = vpop.xlane.xlu0 %788 }
 0x9af   :  { %vm790_vm0 = vcmp.eq.f32.partialorder %v787_v36, %v789_v38  ;;  %v795_v41 = vcvt.f32.s32 %v789_v38 }
 0x9b0   :  { %v791_v40 = vsel %vm790_vm0, %v786_v39, inf }
 0x9b1   :  { %792 = vmin.xlane.f32.xlu1 %v791_v40  ;;  %v796_v43 = vshll.u32 %v795_v41, 16 }
 0xa3e   :  { %v793_v42 = vpop.xlane.xlu1 %792 }
 0xa3f   :  { %v794_v44 = vcvt.f32.s32 %v793_v42 }
 0xa41   :  { %v797_v45 = vadd.s32 %v796_v43, %v794_v44 }
 0xa43   :  { %vm800_vm2 = vcmp.eq.s32.totalorder %v1445_v2, %v797_v45  ;;  %vm801_vm3 = vcmp.eq.s32.totalorder %v1448_v3, %v797_v45  ;;  %vm802_vm4 = vcmp.eq.s32.totalorder %v1451_v4, %v797_v45  ;;  %vm803_vm5 = vcmp.eq.s32.totalorder %v1454_v5, %v797_v45 }
 0xa44   :  { %v804_v46 = vsel %vm800_vm2, -1e+30, %v761_v19  ;;  %v805_v47 = vsel %vm801_vm3, -1e+30, %v762_v20  ;;  %v806_v48 = vsel %vm802_vm4, -1e+30, %v763_v21  ;;  %v799_v49 = vsel %vm798_vm1, %v797_v45, %v756_v22 }
 0xa45   :  { %v807_v50 = vsel %vm803_vm5, -1e+30, %v764_v23  ;;  %v808_v51 = vmax.f32 %v804_v46, %v805_v47 }
 0xa46   :  { %v809_v52 = vmax.f32 %v806_v48, %v807_v50 }
 0xa48   :  { %v810_v53 = vmax.f32 %v808_v51, %v809_v52 }
 0xa4a   :  { %811 = vmax.xlane.f32.xlu0 %v810_v53 }
 0xad7   :  { %v812_v54 = vpop.xlane.xlu0 %811 }
 0xad8   :  { %vm813_vm6 = vcmp.eq.f32.partialorder %v804_v46, %v812_v54  ;;  %vm814_vm7 = vcmp.eq.f32.partialorder %v805_v47, %v812_v54  ;;  %vm815_vm8 = vcmp.eq.f32.partialorder %v806_v48, %v812_v54  ;;  %vm816_vm9 = vcmp.eq.f32.partialorder %v807_v50, %v812_v54 }
 0xad9   :  { %v817_v55 = vsel %vm813_vm6, %v1445_v2, 512  ;;  %v818_v56 = vsel %vm814_vm7, %v1448_v3, 512  ;;  %v819_v57 = vsel %vm815_vm8, %v1451_v4, 512  ;;  %v820_v58 = vsel %vm816_vm9, %v1454_v5, 512 }
 0xada   :  { %vm821_vm10 = vcmp.lt.s32.totalorder %v817_v55, %v818_v56  ;;  %vm823_vm11 = vcmp.lt.s32.totalorder %v819_v57, %v820_v58 }
 0xadb   :  { %v822_v59 = vsel %vm821_vm10, %v817_v55, %v818_v56  ;;  %v824_v60 = vsel %vm823_vm11, %v819_v57, %v820_v58  ;;  %vm884_vm11 = vcmp.eq.s32.totalorder %v1445_v2, 5 }
 0xadc   :  { %vm825_vm12 = vcmp.lt.s32.totalorder %v822_v59, %v824_v60 }
 0xadd   :  { %v826_v61 = vsel %vm825_vm12, %v822_v59, %v824_v60 }
 0xade   :  { %v828_v62 = vshra.s32 %v826_v61, 16  ;;  %v827_v0 = vand.u32 65535, %v826_v61 }
 0xae0   :  { %v830_v63 = vcvt.s32.f32 %v828_v62  ;;  %v829_v6 = vcvt.s32.f32 %v827_v0 }
 0xae2   :  { %831 = vmin.xlane.f32.xlu1 %v830_v63 }
 0xb6f   :  { %v832_v1 = vpop.xlane.xlu1 %831 }
 0xb70   :  { %vm833_vm13 = vcmp.eq.f32.partialorder %v830_v63, %v832_v1  ;;  %v838_v8 = vcvt.f32.s32 %v832_v1 }
 0xb71   :  { %v834_v7 = vsel %vm833_vm13, %v829_v6, inf }
 0xb72   :  { %835 = vmin.xlane.f32.xlu0 %v834_v7  ;;  %v839_v10 = vshll.u32 %v838_v8, 16 }
 0xbff   :  { %v836_v9 = vpop.xlane.xlu0 %835 }
 0xc00   :  { %v837_v11 = vcvt.f32.s32 %v836_v9 }
 0xc02   :  { %v840_v12 = vadd.s32 %v839_v10, %v837_v11 }
 0xc04   :  { %vm843_vm15 = vcmp.eq.s32.totalorder %v1445_v2, %v840_v12  ;;  %vm844_vm0 = vcmp.eq.s32.totalorder %v1448_v3, %v840_v12  ;;  %vm845_vm1 = vcmp.eq.s32.totalorder %v1451_v4, %v840_v12  ;;  %vm846_vm2 = vcmp.eq.s32.totalorder %v1454_v5, %v840_v12 }
 0xc05   :  { %v847_v13 = vsel %vm843_vm15, -1e+30, %v804_v46  ;;  %v848_v14 = vsel %vm844_vm0, -1e+30, %v805_v47  ;;  %v849_v15 = vsel %vm845_vm1, -1e+30, %v806_v48  ;;  %v842_v16 = vsel %vm841_vm14, %v840_v12, %v799_v49 }
 0xc06   :  { %v850_v17 = vsel %vm846_vm2, -1e+30, %v807_v50  ;;  %v851_v18 = vmax.f32 %v847_v13, %v848_v14 }
 0xc07   :  { %v852_v19 = vmax.f32 %v849_v15, %v850_v17 }
 0xc09   :  { %v853_v20 = vmax.f32 %v851_v18, %v852_v19 }
 0xc0b   :  { %854 = vmax.xlane.f32.xlu1 %v853_v20 }
 0xc98   :  { %v855_v21 = vpop.xlane.xlu1 %854 }
 0xc99   :  { %vm856_vm3 = vcmp.eq.f32.partialorder %v847_v13, %v855_v21  ;;  %vm857_vm4 = vcmp.eq.f32.partialorder %v848_v14, %v855_v21  ;;  %vm858_vm5 = vcmp.eq.f32.partialorder %v849_v15, %v855_v21  ;;  %vm859_vm6 = vcmp.eq.f32.partialorder %v850_v17, %v855_v21 }
 0xc9a   :  { %v860_v22 = vsel %vm856_vm3, %v1445_v2, 512  ;;  %v861_v23 = vsel %vm857_vm4, %v1448_v3, 512  ;;  %v862_v24 = vsel %vm858_vm5, %v1451_v4, 512  ;;  %v863_v25 = vsel %vm859_vm6, %v1454_v5, 512 }
 0xc9b   :  { %vm864_vm7 = vcmp.lt.s32.totalorder %v860_v22, %v861_v23  ;;  %vm866_vm8 = vcmp.lt.s32.totalorder %v862_v24, %v863_v25 }
 0xc9c   :  { %v865_v26 = vsel %vm864_vm7, %v860_v22, %v861_v23  ;;  %v867_v27 = vsel %vm866_vm8, %v862_v24, %v863_v25  ;;  %vm927_vm8 = vcmp.eq.s32.totalorder %v1445_v2, 6 }
 0xc9d   :  { %vm868_vm9 = vcmp.lt.s32.totalorder %v865_v26, %v867_v27 }
 0xc9e   :  { %v869_v28 = vsel %vm868_vm9, %v865_v26, %v867_v27 }
 0xc9f   :  { %v871_v29 = vshra.s32 %v869_v28, 16  ;;  %v870_v31 = vand.u32 65535, %v869_v28 }
 0xca1   :  { %v873_v30 = vcvt.s32.f32 %v871_v29  ;;  %v872_v33 = vcvt.s32.f32 %v870_v31 }
 0xca3   :  { %874 = vmin.xlane.f32.xlu0 %v873_v30 }
 0xd30   :  { %v875_v32 = vpop.xlane.xlu0 %874 }
 0xd31   :  { %vm876_vm10 = vcmp.eq.f32.partialorder %v873_v30, %v875_v32  ;;  %v881_v35 = vcvt.f32.s32 %v875_v32 }
 0xd32   :  { %v877_v34 = vsel %vm876_vm10, %v872_v33, inf }
 0xd33   :  { %878 = vmin.xlane.f32.xlu1 %v877_v34  ;;  %v882_v37 = vshll.u32 %v881_v35, 16 }
 0xdc0   :  { %v879_v36 = vpop.xlane.xlu1 %878 }
 0xdc1   :  { %v880_v38 = vcvt.f32.s32 %v879_v36 }
 0xdc3   :  { %v883_v39 = vadd.s32 %v882_v37, %v880_v38 }
 0xdc5   :  { %vm886_vm12 = vcmp.eq.s32.totalorder %v1445_v2, %v883_v39  ;;  %vm887_vm13 = vcmp.eq.s32.totalorder %v1448_v3, %v883_v39  ;;  %vm888_vm14 = vcmp.eq.s32.totalorder %v1451_v4, %v883_v39  ;;  %vm889_vm15 = vcmp.eq.s32.totalorder %v1454_v5, %v883_v39 }
 0xdc6   :  { %v890_v40 = vsel %vm886_vm12, -1e+30, %v847_v13  ;;  %v891_v41 = vsel %vm887_vm13, -1e+30, %v848_v14  ;;  %v892_v42 = vsel %vm888_vm14, -1e+30, %v849_v15  ;;  %v885_v43 = vsel %vm884_vm11, %v883_v39, %v842_v16 }
 0xdc7   :  { %v893_v44 = vsel %vm889_vm15, -1e+30, %v850_v17  ;;  %v894_v45 = vmax.f32 %v890_v40, %v891_v41 }
 0xdc8   :  { %v895_v46 = vmax.f32 %v892_v42, %v893_v44 }
 0xdca   :  { %v896_v47 = vmax.f32 %v894_v45, %v895_v46 }
 0xdcc   :  { %897 = vmax.xlane.f32.xlu0 %v896_v47 }
 0xe59   :  { %v898_v48 = vpop.xlane.xlu0 %897 }
 0xe5a   :  { %vm899_vm0 = vcmp.eq.f32.partialorder %v890_v40, %v898_v48  ;;  %vm900_vm1 = vcmp.eq.f32.partialorder %v891_v41, %v898_v48  ;;  %vm901_vm2 = vcmp.eq.f32.partialorder %v892_v42, %v898_v48  ;;  %vm902_vm3 = vcmp.eq.f32.partialorder %v893_v44, %v898_v48 }
 0xe5b   :  { %v903_v49 = vsel %vm899_vm0, %v1445_v2, 512  ;;  %v904_v50 = vsel %vm900_vm1, %v1448_v3, 512  ;;  %v905_v51 = vsel %vm901_vm2, %v1451_v4, 512  ;;  %v906_v52 = vsel %vm902_vm3, %v1454_v5, 512 }
 0xe5c   :  { %vm907_vm4 = vcmp.lt.s32.totalorder %v903_v49, %v904_v50  ;;  %vm909_vm5 = vcmp.lt.s32.totalorder %v905_v51, %v906_v52 }
 0xe5d   :  { %v908_v53 = vsel %vm907_vm4, %v903_v49, %v904_v50  ;;  %v910_v54 = vsel %vm909_vm5, %v905_v51, %v906_v52 }
 0xe5e   :  { %vm911_vm6 = vcmp.lt.s32.totalorder %v908_v53, %v910_v54 }
 0xe5f   :  { %v912_v55 = vsel %vm911_vm6, %v908_v53, %v910_v54 }
 0xe60   :  { %v914_v56 = vshra.s32 %v912_v55, 16  ;;  %v913_v58 = vand.u32 65535, %v912_v55 }
 0xe62   :  { %v916_v57 = vcvt.s32.f32 %v914_v56  ;;  %v915_v60 = vcvt.s32.f32 %v913_v58 }
 0xe64   :  { %917 = vmin.xlane.f32.xlu1 %v916_v57 }
 0xef1   :  { %v918_v59 = vpop.xlane.xlu1 %917 }
 0xef2   :  { %vm919_vm7 = vcmp.eq.f32.partialorder %v916_v57, %v918_v59  ;;  %v924_v62 = vcvt.f32.s32 %v918_v59 }
 0xef3   :  { %v920_v61 = vsel %vm919_vm7, %v915_v60, inf }
 0xef4   :  { %921 = vmin.xlane.f32.xlu0 %v920_v61  ;;  %v925_v0 = vshll.u32 %v924_v62, 16 }
 0xf81   :  { %v922_v63 = vpop.xlane.xlu0 %921 }
 0xf82   :  { %v923_v1 = vcvt.f32.s32 %v922_v63 }
 0xf84   :  { %v926_v6 = vadd.s32 %v925_v0, %v923_v1 }
 0xf86   :  { %vm929_vm9 = vcmp.eq.s32.totalorder %v1445_v2, %v926_v6  ;;  %vm930_vm10 = vcmp.eq.s32.totalorder %v1448_v3, %v926_v6  ;;  %vm931_vm11 = vcmp.eq.s32.totalorder %v1451_v4, %v926_v6  ;;  %vm932_vm12 = vcmp.eq.s32.totalorder %v1454_v5, %v926_v6 }
 0xf87   :  { %v933_v7 = vsel %vm929_vm9, -1e+30, %v890_v40  ;;  %v934_v8 = vsel %vm930_vm10, -1e+30, %v891_v41  ;;  %v935_v9 = vsel %vm931_vm11, -1e+30, %v892_v42  ;;  %v928_v10 = vsel %vm927_vm8, %v926_v6, %v885_v43 }
 0xf88   :  { %v936_v11 = vsel %vm932_vm12, -1e+30, %v893_v44  ;;  %v937_v12 = vmax.f32 %v933_v7, %v934_v8 }
 0xf89   :  { %v938_v13 = vmax.f32 %v935_v9, %v936_v11 }
 0xf8b   :  { %v939_v14 = vmax.f32 %v937_v12, %v938_v13 }
 0xf8d   :  { %940 = vmax.xlane.f32.xlu1 %v939_v14 }
0x101a   :  { %v941_v15 = vpop.xlane.xlu1 %940 }
0x101b   :  { %vm942_vm13 = vcmp.eq.f32.partialorder %v933_v7, %v941_v15  ;;  %vm943_vm14 = vcmp.eq.f32.partialorder %v934_v8, %v941_v15  ;;  %vm944_vm15 = vcmp.eq.f32.partialorder %v935_v9, %v941_v15  ;;  %vm945_vm0 = vcmp.eq.f32.partialorder %v936_v11, %v941_v15 }
0x101c   :  { %v946_v16 = vsel %vm942_vm13, %v1445_v2, 512  ;;  %v947_v17 = vsel %vm943_vm14, %v1448_v3, 512  ;;  %v948_v18 = vsel %vm944_vm15, %v1451_v4, 512  ;;  %v949_v19 = vsel %vm945_vm0, %v1454_v5, 512 }
0x101d   :  { %vm950_vm1 = vcmp.lt.s32.totalorder %v946_v16, %v947_v17  ;;  %vm952_vm2 = vcmp.lt.s32.totalorder %v948_v18, %v949_v19 }
0x101e   :  { %v951_v20 = vsel %vm950_vm1, %v946_v16, %v947_v17  ;;  %v953_v21 = vsel %vm952_vm2, %v948_v18, %v949_v19 }
0x101f   :  { %vm954_vm3 = vcmp.lt.s32.totalorder %v951_v20, %v953_v21 }
0x1020   :  { %v955_v22 = vsel %vm954_vm3, %v951_v20, %v953_v21 }
0x1021   :  { %v957_v23 = vshra.s32 %v955_v22, 16  ;;  %v956_v25 = vand.u32 65535, %v955_v22 }
0x1023   :  { %v959_v24 = vcvt.s32.f32 %v957_v23  ;;  %v958_v27 = vcvt.s32.f32 %v956_v25 }
0x1025   :  { %960 = vmin.xlane.f32.xlu0 %v959_v24 }
0x10b2   :  { %v961_v26 = vpop.xlane.xlu0 %960 }
0x10b3   :  { %vm962_vm4 = vcmp.eq.f32.partialorder %v959_v24, %v961_v26 }
0x10b4   :  { %v963_v28 = vsel %vm962_vm4, %v958_v27, inf }
0x10b5   :  { %964 = vmin.xlane.f32.xlu1 %v963_v28 }
0x10b6   :  { %1265 = shalt.err (!%p1262_p8)
}
0x10b7   :  { %s1266_s12 = scalar_lea.hbm %s1558_s10, 512 }
0x10b8   :  { %p1267_p9 = scmp.ne.s32.totalorder %s1558_s10, %s1266_s12  ;;  %p1270_p10 = scmp.lt.u32.totalorder %s1266_s12, %s1558_s10 }
0x10ba   :  { %p1272_p11 = pnand %p1270_p10, %p1267_p9 }
0x10bc   :  { %1275 = shalt.err (!%p1272_p11)
}
0x10bd   :  { %992 = dma.vmem_to_hbm [thread:$0]  %s990_s6, 512, %s1558_s10, [#allocation12]   ;;  %v967_v3 = vcvt.f32.s32 %v961_v26  ;;  %vm970_vm5 = vcmp.eq.s32.totalorder %v1445_v2, 7 }
0x10be   :  { %s1320_s14 = smov [#allocation10]  }
0x10bf   :  { %v968_v5 = vshll.u32 %v967_v3, 16  ;;  %s979_s19 = sshll.u32 %s1320_s14, 4  ;;  %s980_s19 = int_to_ptr.vmem [resolvable:$true] %s979_s19 }
0x10c0   :  { %s1276_s20 = scalar_lea.vmem %s980_s19, 128  ;;  %p1281_p13 = scmp.lt.s32.totalorder %s980_s19, %s980_s19 }
0x10c1   :  { %p1277_p12 = scmp.ne.s32.totalorder %s980_s19, %s1276_s20  ;;  %p1282_p0 = scmp.lt.s32.totalorder %s1276_s20, %s1276_s20 }
0x10c3   :  { %p1283_p1 = por %p1282_p0, %p1281_p13 }
0x10c5   :  { %p1284_p2 = pnand %p1283_p1, %p1277_p12 }
0x1142   :  { %v965_v4 = vpop.xlane.xlu1 %964 }
0x1143   :  { %v966_v29 = vcvt.f32.s32 %v965_v4 }
0x1145   :  { %v969_v30 = vadd.s32 %v968_v5, %v966_v29 }
0x1147   :  { %v971_v31 = vsel %vm970_vm5, %v969_v30, %v928_v10 }
0x1148   :  { %972 = vst [vmem:[#allocation10] sm:$0xff] %v971_v31 }
0x1149   :  { %1287 = shalt.err (!%p1284_p2)
}
0x114a   :  { %s1288_s23 = scalar_lea.hbm %s1557_s9, 128 }
0x114b   :  { %p1289_p3 = scmp.ne.s32.totalorder %s1557_s9, %s1288_s23  ;;  %p1292_p4 = scmp.lt.u32.totalorder %s1288_s23, %s1557_s9 }
0x114d   :  { %p1294_p5 = pnand %p1292_p4, %p1289_p3 }
0x114f   :  { %1297 = shalt.err (!%p1294_p5)
}
0x1150   :  { %982 = dma.vmem_to_hbm [thread:$0]  %s980_s19, 128, %s1557_s9, [#allocation4]  }
0x1151   :  { %1304 = dma.done.wait [#allocation4], 128  }
0x1152   :  { %1305 = vsyncadd [#allocation4], 4294967168 }
0x1153   :  { %1306 = dma.done.wait [#allocation12], 512  }
0x1154   :  { %1307 = vsyncadd [#allocation12], 4294966784 }
0x1155   :  { %999 = vsyncpa [#allocation3], 1 }
0x1156   :  { %1000 = vsyncpa [#allocation6], 1 }
0x1157   :  { %1001 = vsyncpa [#allocation9], 1 }
0x1158   :  { %1002 = vsyncpa [#allocation4], 1 }
0x1159   :  { %1003 = vsyncpa [#allocation12], 1 }

</bundles_post_ra>
